<compile_context>
chip_gen: v7x
topology: tpu7x:2x2x1
jax: 0.10.0
libtpu: 0.0.40
codegen_flags: <defaults>
</compile_context>

<pallas_src>
import jax
import jax.numpy as jnp
from jax.experimental import pallas as pl
from jax.experimental.pallas import tpu as pltpu


# ----------------------------------------------------------------------------
# Fused kernel: per batch image -> final (H, W*out_fea) lane-dense slab.
# ----------------------------------------------------------------------------
def _edge_fused_kernel(
    x1_ref, x2_ref, x3_ref,          # (1, Hl, Wl*Cin_l) activations
    gb1_ref, gb2_ref, gb3_ref,       # (3, Wl*Cin_l, W*out) folded banded weights
    ah2_ref, ah3_ref,                # (H, H2), (H, H3) H-resize matrices
    fbias_ref,                       # (H, W*out) precomputed total bias plane
    o_ref,                           # (1, H, W*out)
    pad1_ref, pad2_ref, pad3_ref,    # (Hl+2, Wl*Cin_l) VMEM H-halo scratch
):
    def level(x_ref, gb_ref, pad_ref):
        hl = pad_ref.shape[0] - 2
        # Only the two H-halo rows need clearing (the W halo is folded into the
        # banded weights); the interior is fully overwritten right below.
        z = jnp.zeros((1, pad_ref.shape[1]), pad_ref.dtype)
        pad_ref[0:1, :] = z
        pad_ref[hl + 1:hl + 2, :] = z
        pad_ref[1:hl + 1, :] = x_ref[0]
        # Three lane-dense matmuls (K = Wl*Cin_l, N = W*out_fea), f32 accum.
        acc = jnp.dot(pad_ref[0:hl, :], gb_ref[0],
                      preferred_element_type=jnp.float32)
        for dh in (1, 2):
            acc = acc + jnp.dot(pad_ref[dh:dh + hl, :], gb_ref[dh],
                                preferred_element_type=jnp.float32)
        return acc                                   # (hl, W*out) f32

    # level 1 (full resolution) + all precomputed biases
    acc = fbias_ref[...] + level(x1_ref, gb1_ref, pad1_ref)
    # levels 2/3: W-resize + conv5 slice already folded into GB; only the
    # H-resize matmul remains.
    acc = acc + jnp.dot(ah2_ref[...], level(x2_ref, gb2_ref, pad2_ref),
                        preferred_element_type=jnp.float32)
    acc = acc + jnp.dot(ah3_ref[...], level(x3_ref, gb3_ref, pad3_ref),
                        preferred_element_type=jnp.float32)
    o_ref[0] = acc.astype(o_ref.dtype)


# ----------------------------------------------------------------------------
# Parameter preparation (hoisted out of the per-call path)
# ----------------------------------------------------------------------------
def fold_bn(gamma, beta, mean, var, eps=1e-5):
    scale = gamma / jnp.sqrt(var + eps)
    bias = beta - mean * scale
    return scale, bias


def _interp_matrix(out_size, in_size):
    # PyTorch F.interpolate(mode='bilinear', align_corners=False) 1-D weights.
    scale = in_size / out_size
    dst = jnp.arange(out_size, dtype=jnp.float32)
    src = jnp.maximum((dst + 0.5) * scale - 0.5, 0.0)
    i0 = jnp.minimum(jnp.floor(src).astype(jnp.int32), in_size - 1)
    i1 = jnp.minimum(i0 + 1, in_size - 1)
    lam = src - i0.astype(jnp.float32)
    rows = jnp.arange(out_size)
    A = jnp.zeros((out_size, in_size), jnp.float32)
    A = A.at[rows, i0].add(1.0 - lam)
    A = A.at[rows, i1].add(lam)
    return A


def _conv3x3_nhwc(x, w, b):
    # Zero-padded 3x3 conv, NHWC, f32 (prepare/reference helper only).
    N, H, W, _ = x.shape
    xp = jnp.pad(x, ((0, 0), (1, 1), (1, 1), (0, 0)))
    out = jnp.zeros((N, H, W, w.shape[-1]), jnp.float32)
    for dh in range(3):
        for dw in range(3):
            out = out + jnp.einsum("nhwc,cd->nhwd",
                                   xp[:, dh:dh + H, dw:dw + W, :], w[dh, dw])
    return out + b


def prepare_params(params, spatial_shapes, compute_dtype=jnp.float32):
    """spatial_shapes: ((H,W), (H2,W2), (H3,W3)); returns kernel-ready arrays.

    Folds (exact, inference-mode BN — the PyTorch module has NO activation
    between conv{1,2,3}+BN and conv4):
      conv1x1 * BN-scale -> conv4 taps -> (level 2/3 only) bilinear W-resize
      -> conv5 slice
    into banded weight stacks GB_l[dh]; all bias terms into one plane.
    """
    (H, W), (H2, W2), (H3, W3) = spatial_shapes
    out = params["b5"].shape[0]
    w4, b4, w5, b5 = params["w4"], params["b4"], params["w5"], params["b5"]

    def shift_mat(Wl, dw):
        # S[src, dst] = 1 iff src == dst + dw - 1 (zero-pad: out-of-range taps drop)
        src = jnp.arange(Wl)[:, None]
        dst = jnp.arange(Wl)[None, :]
        return (src == dst + dw - 1).astype(jnp.float32)

    def banded_level(w1x1, bn, Hl, Wl):
        s, b = fold_bn(*bn)
        wf = w1x1 * s[None, :]                               # (Cin, mid), BN scale folded
        wc = jnp.einsum("cm,hwmo->hwco", wf, w4)             # (3,3,Cin,out): 1x1 folded into taps
        g = jnp.stack([
            sum(jnp.kron(shift_mat(Wl, dw), wc[dh, dw]) for dw in range(3))
            for dh in range(3)])                             # (3, Wl*Cin, Wl*out)
        # Positional bias plane: conv4 over the constant BN-bias field (exact,
        # accounts for zero padding at image borders) + conv4 bias.
        bias_field = jnp.broadcast_to(b, (1, Hl, Wl, b.shape[0]))
        bp = _conv3x3_nhwc(bias_field, w4, b4)[0]            # (Hl, Wl, out)
        return g, bp.reshape(Hl, Wl * out)

    g1, bp1 = banded_level(params["w1"], params["bn1"], H, W)
    g2, bp2 = banded_level(params["w2"], params["bn2"], H2, W2)
    g3, bp3 = banded_level(params["w3"], params["bn3"], H3, W3)

    w5a, w5b, w5c = w5[:out], w5[out:2 * out], w5[2 * out:]
    Ah2, Aw2 = _interp_matrix(H, H2), _interp_matrix(W, W2)
    Ah3, Aw3 = _interp_matrix(H, H3), _interp_matrix(W, W3)

    # Per-level conv5 slice (and for levels 2/3 the bilinear W-resize) as a
    # single (Wl*out, W*out) matrix, folded into the banded weights.
    m1 = jnp.kron(jnp.eye(W, dtype=jnp.float32), w5a)        # (W*out,  W*out)
    m2 = jnp.kron(Aw2.T, w5b)                                # (W2*out, W*out)
    m3 = jnp.kron(Aw3.T, w5c)                                # (W3*out, W*out)

    gb1 = jnp.einsum("dkx,xy->dky", g1, m1)                  # (3, W*C1,  W*out)
    gb2 = jnp.einsum("dkx,xy->dky", g2, m2)                  # (3, W2*C2, W*out)
    gb3 = jnp.einsum("dkx,xy->dky", g3, m3)                  # (3, W3*C3, W*out)

    fbias = (bp1 @ m1
             + Ah2 @ (bp2 @ m2)
             + Ah3 @ (bp3 @ m3)
             + jnp.tile(b5, W)[None, :])                     # (H, W*out)

    cd = compute_dtype
    return dict(gb1=gb1.astype(cd), gb2=gb2.astype(cd), gb3=gb3.astype(cd),
                ah2=Ah2, ah3=Ah3, fbias=fbias,
                out_fea=out, compute_dtype=cd)


# ----------------------------------------------------------------------------
# Forward
# ----------------------------------------------------------------------------
def edge_module_forward(prep, x1, x2, x3):
    N, H, W, C1 = x1.shape
    _, H2, W2, C2 = x2.shape
    _, H3, W3, C3 = x3.shape
    out = prep["out_fea"]
    cd = prep["compute_dtype"]
    WO = W * out

    # Free metadata reshape to lane-dense 2-D rows (channels*W on lanes);
    # optional bf16 cast halves HBM->VMEM bytes for the MXU operands.
    x1r = x1.reshape(N, H, W * C1).astype(cd)
    x2r = x2.reshape(N, H2, W2 * C2).astype(cd)
    x3r = x3.reshape(N, H3, W3 * C3).astype(cd)

    def const(shape):
        return pl.BlockSpec(shape, lambda n, _s=shape: (0,) * len(_s))

    out_flat = pl.pallas_call(
        _edge_fused_kernel,
        out_shape=jax.ShapeDtypeStruct((N, H, WO), jnp.float32),
        grid=(N,),
        in_specs=[
            pl.BlockSpec((1, H, W * C1), lambda n: (n, 0, 0)),
            pl.BlockSpec((1, H2, W2 * C2), lambda n: (n, 0, 0)),
            pl.BlockSpec((1, H3, W3 * C3), lambda n: (n, 0, 0)),
            const((3, W * C1, WO)),
            const((3, W2 * C2, WO)),
            const((3, W3 * C3, WO)),
            const((H, H2)),
            const((H, H3)),
            const((H, WO)),
        ],
        out_specs=pl.BlockSpec((1, H, WO), lambda n: (n, 0, 0)),
        scratch_shapes=[
            pltpu.VMEM((H + 2, W * C1), cd),
            pltpu.VMEM((H2 + 2, W2 * C2), cd),
            pltpu.VMEM((H3 + 2, W3 * C3), cd),
        ],
        compiler_params=pltpu.CompilerParams(
            dimension_semantics=("parallel",),
            vmem_limit_bytes=32 * 1024 * 1024,
        ),
    )(x1r, x2r, x3r,
      prep["gb1"], prep["gb2"], prep["gb3"],
      prep["ah2"], prep["ah3"], prep["fbias"])

    # (N, H, W*out) -> (N, H, W, out): free metadata reshape.
    return out_flat.reshape(N, H, W, out)


# ----------------------------------------------------------------------------
# Pure-JAX reference (mirrors the PyTorch module, inference-mode BN).
# ----------------------------------------------------------------------------
def _reference_forward(params, x1, x2, x3):
    def conv1x1_bn(x, w, bn):
        s, b = fold_bn(*bn)
        return jnp.einsum("nhwc,cd->nhwd", x, w) * s + b

    def resize(x, Ho, Wo):
        Ah = _interp_matrix(Ho, x.shape[1])
        Aw = _interp_matrix(Wo, x.shape[2])
        y = jnp.einsum("Hh,nhwc->nHwc", Ah, x)
        return jnp.einsum("Ww,nHwc->nHWc", Aw, y)

    e1 = _conv3x3_nhwc(conv1x1_bn(x1, params["w1"], params["bn1"]),
                       params["w4"], params["b4"])
    e2 = _conv3x3_nhwc(conv1x1_bn(x2, params["w2"], params["bn2"]),
                       params["w4"], params["b4"])
    e3 = _conv3x3_nhwc(conv1x1_bn(x3, params["w3"], params["bn3"]),
                       params["w4"], params["b4"])
    H, W = x1.shape[1], x1.shape[2]
    e2 = resize(e2, H, W)
    e3 = resize(e3, H, W)
    e = jnp.concatenate([e1, e2, e3], axis=-1)
    return jnp.einsum("nhwc,cd->nhwd", e, params["w5"]) + params["b5"]


# ----------------------------------------------------------------------------
# Params / demo
# ----------------------------------------------------------------------------
def init_params(key, in_fea, mid_fea, out_fea):
    ks = jax.random.split(key, 10)

    def bn_params(k, c):
        k1, k2, k3, k4 = jax.random.split(k, 4)
        gamma = 1.0 + 0.1 * jax.random.normal(k1, (c,), jnp.float32)
        beta = 0.1 * jax.random.normal(k2, (c,), jnp.float32)
        mean = 0.1 * jax.random.normal(k3, (c,), jnp.float32)
        var = jnp.abs(jax.random.normal(k4, (c,), jnp.float32)) + 0.5
        return (gamma, beta, mean, var)

    return {
        "w1": 0.1 * jax.random.normal(ks[0], (in_fea[0], mid_fea), jnp.float32),
        "w2": 0.1 * jax.random.normal(ks[1], (in_fea[1], mid_fea), jnp.float32),
        "w3": 0.1 * jax.random.normal(ks[2], (in_fea[2], mid_fea), jnp.float32),
        "bn1": bn_params(ks[3], mid_fea),
        "bn2": bn_params(ks[4], mid_fea),
        "bn3": bn_params(ks[5], mid_fea),
        "w4": 0.1 * jax.random.normal(ks[6], (3, 3, mid_fea, out_fea), jnp.float32),
        "b4": 0.1 * jax.random.normal(ks[7], (out_fea,), jnp.float32),
        "w5": 0.1 * jax.random.normal(ks[8], (3 * out_fea, out_fea), jnp.float32),
        "b5": 0.1 * jax.random.normal(ks[9], (out_fea,), jnp.float32),
    }


if __name__ == "__main__":
    N = 2
    in_fea = [16, 32, 64]
    mid_fea = 32
    out_fea = 8
    H1, W1 = 16, 16
    H2, W2 = 8, 8
    H3, W3 = 4, 4

    key = jax.random.PRNGKey(0)
    k_p, k1, k2, k3 = jax.random.split(key, 4)
    params = init_params(k_p, in_fea, mid_fea, out_fea)

    x1 = jax.random.normal(k1, (N, H1, W1, in_fea[0]), jnp.float32)
    x2 = jax.random.normal(k2, (N, H2, W2, in_fea[1]), jnp.float32)
    x3 = jax.random.normal(k3, (N, H3, W3, in_fea[2]), jnp.float32)

    shapes = ((H1, W1), (H2, W2), (H3, W3))
    ref = jax.block_until_ready(_reference_forward(params, x1, x2, x3))
    ref_max = float(jnp.max(jnp.abs(ref))) + 1e-6

    # ---- f32 path (default): tightened tolerance per review ----
    prep = prepare_params(params, shapes, compute_dtype=jnp.float32)
    out = jax.block_until_ready(edge_module_forward(prep, x1, x2, x3))
    assert out.shape == (N, H1, W1, out_fea)
    rel = float(jnp.max(jnp.abs(out - ref))) / ref_max
    # 5e-3 is 10x tighter than before while still tolerating the backend's
    # default f32 MXU matmul decomposition and the weight-folding reassociation.
    assert rel < 5e-3, f"f32 mismatch vs reference: rel_err={rel}"

    # ---- bf16 MXU-operand path (v6e/v7x recommendation), f32 accumulation ----
    prep_bf16 = prepare_params(params, shapes, compute_dtype=jnp.bfloat16)
    out_bf16 = jax.block_until_ready(edge_module_forward(prep_bf16, x1, x2, x3))
    rel_bf16 = float(jnp.max(jnp.abs(out_bf16 - ref))) / ref_max
    assert rel_bf16 < 5e-2, f"bf16 mismatch vs reference: rel_err={rel_bf16}"

    print("KERNEL_OK")
</pallas_src>

<mosaic_0001>
module attributes {stable_mosaic.version = 11 : i64} {
  func.func @_edge_fused_kernel(%arg0: i32, %arg1: memref<1x16x256xf32, #tpu.memory_space<vmem>>, %arg2: memref<1x8x256xf32, #tpu.memory_space<vmem>>, %arg3: memref<1x4x256xf32, #tpu.memory_space<vmem>>, %arg4: memref<3x256x128xf32, #tpu.memory_space<vmem>>, %arg5: memref<3x256x128xf32, #tpu.memory_space<vmem>>, %arg6: memref<3x256x128xf32, #tpu.memory_space<vmem>>, %arg7: memref<16x8xf32, #tpu.memory_space<vmem>>, %arg8: memref<16x4xf32, #tpu.memory_space<vmem>>, %arg9: memref<16x128xf32, #tpu.memory_space<vmem>>, %arg10: memref<1x16x128xf32, #tpu.memory_space<vmem>>, %arg11: memref<18x256xf32, #tpu.memory_space<vmem>>, %arg12: memref<10x256xf32, #tpu.memory_space<vmem>>, %arg13: memref<6x256xf32, #tpu.memory_space<vmem>>) attributes {dimension_semantics = [#tpu.dimension_semantics<parallel>], iteration_bounds = array<i64: 2>, scalar_prefetch = 0 : i64, scratch_operands = 3 : i64, tpu.core_type = #tpu.core_type<tc>, window_params = [{transform_indices = @transform_0, window_bounds = array<i64: 1, 16, 256>}, {transform_indices = @transform_1, window_bounds = array<i64: 1, 8, 256>}, {transform_indices = @transform_2, window_bounds = array<i64: 1, 4, 256>}, {pipeline_mode = #tpu.pipeline_mode<synchronous>, transform_indices = @transform_3, window_bounds = array<i64: 3, 256, 128>}, {pipeline_mode = #tpu.pipeline_mode<synchronous>, transform_indices = @transform_4, window_bounds = array<i64: 3, 256, 128>}, {pipeline_mode = #tpu.pipeline_mode<synchronous>, transform_indices = @transform_5, window_bounds = array<i64: 3, 256, 128>}, {pipeline_mode = #tpu.pipeline_mode<synchronous>, transform_indices = @transform_6, window_bounds = array<i64: 16, 8>}, {pipeline_mode = #tpu.pipeline_mode<synchronous>, transform_indices = @transform_7, window_bounds = array<i64: 16, 4>}, {pipeline_mode = #tpu.pipeline_mode<synchronous>, transform_indices = @transform_8, window_bounds = array<i64: 16, 128>}, {transform_indices = @transform_9, window_bounds = array<i64: 1, 16, 128>}]} {
    %c0 = arith.constant 0 : index
    %c0_0 = arith.constant 0 : index
    %0 = vector.load %arg9[%c0, %c0_0] : memref<16x128xf32, #tpu.memory_space<vmem>>, vector<16x128xf32>
    %cst = arith.constant 0.000000e+00 : f32
    %1 = vector.broadcast %cst : f32 to vector<1x256xf32>
    %c0_1 = arith.constant 0 : index
    %c0_2 = arith.constant 0 : index
    %2 = vector.load %arg11[%c0_1, %c0_2] : memref<18x256xf32, #tpu.memory_space<vmem>>, vector<1x256xf32>
    tpu.vector_store %arg11[%c0_1, %c0_2], %1 {strides = array<i32>} : memref<18x256xf32, #tpu.memory_space<vmem>>, vector<1x256xf32>,
    %c17 = arith.constant 17 : index
    %c0_3 = arith.constant 0 : index
    %3 = vector.load %arg11[%c17, %c0_3] : memref<18x256xf32, #tpu.memory_space<vmem>>, vector<1x256xf32>
    tpu.vector_store %arg11[%c17, %c0_3], %1 {strides = array<i32>} : memref<18x256xf32, #tpu.memory_space<vmem>>, vector<1x256xf32>,
    %c0_4 = arith.constant 0 : index
    %c0_5 = arith.constant 0 : index
    %c0_6 = arith.constant 0 : index
    %4 = vector.load %arg1[%c0_4, %c0_5, %c0_6] : memref<1x16x256xf32, #tpu.memory_space<vmem>>, vector<1x16x256xf32>
    %5 = vector.shape_cast %4 : vector<1x16x256xf32> to vector<16x256xf32>
    %c1 = arith.constant 1 : index
    %c0_7 = arith.constant 0 : index
    %6 = vector.load %arg11[%c1, %c0_7] : memref<18x256xf32, #tpu.memory_space<vmem>>, vector<16x256xf32>
    tpu.vector_store %arg11[%c1, %c0_7], %5 {strides = array<i32>} : memref<18x256xf32, #tpu.memory_space<vmem>>, vector<16x256xf32>,
    %c0_8 = arith.constant 0 : index
    %c0_9 = arith.constant 0 : index
    %7 = vector.load %arg11[%c0_8, %c0_9] : memref<18x256xf32, #tpu.memory_space<vmem>>, vector<16x256xf32>
    %c0_10 = arith.constant 0 : index
    %c0_11 = arith.constant 0 : index
    %c0_12 = arith.constant 0 : index
    %8 = vector.load %arg4[%c0_10, %c0_11, %c0_12] : memref<3x256x128xf32, #tpu.memory_space<vmem>>, vector<1x256x128xf32>
    %9 = vector.shape_cast %8 : vector<1x256x128xf32> to vector<256x128xf32>
    %cst_13 = arith.constant dense<0.000000e+00> : vector<16x128xf32>
    %10 = tpu.matmul %7, %9, %cst_13 {dimension_numbers = #tpu.dot_dimension_numbers<[1], [0], [0], [1], [0, 0, 1, 1], [], []>} : vector<16x256xf32>, vector<256x128xf32>, vector<16x128xf32> -> vector<16x128xf32>
    %c1_14 = arith.constant 1 : index
    %c0_15 = arith.constant 0 : index
    %11 = vector.load %arg11[%c1_14, %c0_15] : memref<18x256xf32, #tpu.memory_space<vmem>>, vector<16x256xf32>
    %c1_16 = arith.constant 1 : index
    %c0_17 = arith.constant 0 : index
    %c0_18 = arith.constant 0 : index
    %12 = vector.load %arg4[%c1_16, %c0_17, %c0_18] : memref<3x256x128xf32, #tpu.memory_space<vmem>>, vector<1x256x128xf32>
    %13 = vector.shape_cast %12 : vector<1x256x128xf32> to vector<256x128xf32>
    %cst_19 = arith.constant dense<0.000000e+00> : vector<16x128xf32>
    %14 = tpu.matmul %11, %13, %cst_19 {dimension_numbers = #tpu.dot_dimension_numbers<[1], [0], [0], [1], [0, 0, 1, 1], [], []>} : vector<16x256xf32>, vector<256x128xf32>, vector<16x128xf32> -> vector<16x128xf32>
    %15 = arith.addf %10, %14 : vector<16x128xf32>
    %c2 = arith.constant 2 : index
    %c0_20 = arith.constant 0 : index
    %16 = vector.load %arg11[%c2, %c0_20] : memref<18x256xf32, #tpu.memory_space<vmem>>, vector<16x256xf32>
    %c2_21 = arith.constant 2 : index
    %c0_22 = arith.constant 0 : index
    %c0_23 = arith.constant 0 : index
    %17 = vector.load %arg4[%c2_21, %c0_22, %c0_23] : memref<3x256x128xf32, #tpu.memory_space<vmem>>, vector<1x256x128xf32>
    %18 = vector.shape_cast %17 : vector<1x256x128xf32> to vector<256x128xf32>
    %cst_24 = arith.constant dense<0.000000e+00> : vector<16x128xf32>
    %19 = tpu.matmul %16, %18, %cst_24 {dimension_numbers = #tpu.dot_dimension_numbers<[1], [0], [0], [1], [0, 0, 1, 1], [], []>} : vector<16x256xf32>, vector<256x128xf32>, vector<16x128xf32> -> vector<16x128xf32>
    %20 = arith.addf %15, %19 : vector<16x128xf32>
    %21 = arith.addf %0, %20 : vector<16x128xf32>
    %c0_25 = arith.constant 0 : index
    %c0_26 = arith.constant 0 : index
    %22 = vector.load %arg7[%c0_25, %c0_26] : memref<16x8xf32, #tpu.memory_space<vmem>>, vector<16x8xf32>
    %cst_27 = arith.constant 0.000000e+00 : f32
    %23 = vector.broadcast %cst_27 : f32 to vector<1x256xf32>
    %c0_28 = arith.constant 0 : index
    %c0_29 = arith.constant 0 : index
    %24 = vector.load %arg12[%c0_28, %c0_29] : memref<10x256xf32, #tpu.memory_space<vmem>>, vector<1x256xf32>
    tpu.vector_store %arg12[%c0_28, %c0_29], %23 {strides = array<i32>} : memref<10x256xf32, #tpu.memory_space<vmem>>, vector<1x256xf32>,
    %c9 = arith.constant 9 : index
    %c0_30 = arith.constant 0 : index
    %25 = vector.load %arg12[%c9, %c0_30] : memref<10x256xf32, #tpu.memory_space<vmem>>, vector<1x256xf32>
    tpu.vector_store %arg12[%c9, %c0_30], %23 {strides = array<i32>} : memref<10x256xf32, #tpu.memory_space<vmem>>, vector<1x256xf32>,
    %c0_31 = arith.constant 0 : index
    %c0_32 = arith.constant 0 : index
    %c0_33 = arith.constant 0 : index
    %26 = vector.load %arg2[%c0_31, %c0_32, %c0_33] : memref<1x8x256xf32, #tpu.memory_space<vmem>>, vector<1x8x256xf32>
    %27 = vector.shape_cast %26 : vector<1x8x256xf32> to vector<8x256xf32>
    %c1_34 = arith.constant 1 : index
    %c0_35 = arith.constant 0 : index
    %28 = vector.load %arg12[%c1_34, %c0_35] : memref<10x256xf32, #tpu.memory_space<vmem>>, vector<8x256xf32>
    tpu.vector_store %arg12[%c1_34, %c0_35], %27 {strides = array<i32>} : memref<10x256xf32, #tpu.memory_space<vmem>>, vector<8x256xf32>,
    %c0_36 = arith.constant 0 : index
    %c0_37 = arith.constant 0 : index
    %29 = vector.load %arg12[%c0_36, %c0_37] : memref<10x256xf32, #tpu.memory_space<vmem>>, vector<8x256xf32>
    %c0_38 = arith.constant 0 : index
    %c0_39 = arith.constant 0 : index
    %c0_40 = arith.constant 0 : index
    %30 = vector.load %arg5[%c0_38, %c0_39, %c0_40] : memref<3x256x128xf32, #tpu.memory_space<vmem>>, vector<1x256x128xf32>
    %31 = vector.shape_cast %30 : vector<1x256x128xf32> to vector<256x128xf32>
    %cst_41 = arith.constant dense<0.000000e+00> : vector<8x128xf32>
    %32 = tpu.matmul %29, %31, %cst_41 {dimension_numbers = #tpu.dot_dimension_numbers<[1], [0], [0], [1], [0, 0, 1, 1], [], []>} : vector<8x256xf32>, vector<256x128xf32>, vector<8x128xf32> -> vector<8x128xf32>
    %c1_42 = arith.constant 1 : index
    %c0_43 = arith.constant 0 : index
    %33 = vector.load %arg12[%c1_42, %c0_43] : memref<10x256xf32, #tpu.memory_space<vmem>>, vector<8x256xf32>
    %c1_44 = arith.constant 1 : index
    %c0_45 = arith.constant 0 : index
    %c0_46 = arith.constant 0 : index
    %34 = vector.load %arg5[%c1_44, %c0_45, %c0_46] : memref<3x256x128xf32, #tpu.memory_space<vmem>>, vector<1x256x128xf32>
    %35 = vector.shape_cast %34 : vector<1x256x128xf32> to vector<256x128xf32>
    %cst_47 = arith.constant dense<0.000000e+00> : vector<8x128xf32>
    %36 = tpu.matmul %33, %35, %cst_47 {dimension_numbers = #tpu.dot_dimension_numbers<[1], [0], [0], [1], [0, 0, 1, 1], [], []>} : vector<8x256xf32>, vector<256x128xf32>, vector<8x128xf32> -> vector<8x128xf32>
    %37 = arith.addf %32, %36 : vector<8x128xf32>
    %c2_48 = arith.constant 2 : index
    %c0_49 = arith.constant 0 : index
    %38 = vector.load %arg12[%c2_48, %c0_49] : memref<10x256xf32, #tpu.memory_space<vmem>>, vector<8x256xf32>
    %c2_50 = arith.constant 2 : index
    %c0_51 = arith.constant 0 : index
    %c0_52 = arith.constant 0 : index
    %39 = vector.load %arg5[%c2_50, %c0_51, %c0_52] : memref<3x256x128xf32, #tpu.memory_space<vmem>>, vector<1x256x128xf32>
    %40 = vector.shape_cast %39 : vector<1x256x128xf32> to vector<256x128xf32>
    %cst_53 = arith.constant dense<0.000000e+00> : vector<8x128xf32>
    %41 = tpu.matmul %38, %40, %cst_53 {dimension_numbers = #tpu.dot_dimension_numbers<[1], [0], [0], [1], [0, 0, 1, 1], [], []>} : vector<8x256xf32>, vector<256x128xf32>, vector<8x128xf32> -> vector<8x128xf32>
    %42 = arith.addf %37, %41 : vector<8x128xf32>
    %cst_54 = arith.constant dense<0.000000e+00> : vector<16x128xf32>
    %43 = tpu.matmul %22, %42, %cst_54 {dimension_numbers = #tpu.dot_dimension_numbers<[1], [0], [0], [1], [0, 0, 1, 1], [], []>} : vector<16x8xf32>, vector<8x128xf32>, vector<16x128xf32> -> vector<16x128xf32>
    %44 = arith.addf %21, %43 : vector<16x128xf32>
    %c0_55 = arith.constant 0 : index
    %c0_56 = arith.constant 0 : index
    %45 = vector.load %arg8[%c0_55, %c0_56] : memref<16x4xf32, #tpu.memory_space<vmem>>, vector<16x4xf32>
    %cst_57 = arith.constant 0.000000e+00 : f32
    %46 = vector.broadcast %cst_57 : f32 to vector<1x256xf32>
    %c0_58 = arith.constant 0 : index
    %c0_59 = arith.constant 0 : index
    %47 = vector.load %arg13[%c0_58, %c0_59] : memref<6x256xf32, #tpu.memory_space<vmem>>, vector<1x256xf32>
    tpu.vector_store %arg13[%c0_58, %c0_59], %46 {strides = array<i32>} : memref<6x256xf32, #tpu.memory_space<vmem>>, vector<1x256xf32>,
    %c5 = arith.constant 5 : index
    %c0_60 = arith.constant 0 : index
    %48 = vector.load %arg13[%c5, %c0_60] : memref<6x256xf32, #tpu.memory_space<vmem>>, vector<1x256xf32>
    tpu.vector_store %arg13[%c5, %c0_60], %46 {strides = array<i32>} : memref<6x256xf32, #tpu.memory_space<vmem>>, vector<1x256xf32>,
    %c0_61 = arith.constant 0 : index
    %c0_62 = arith.constant 0 : index
    %c0_63 = arith.constant 0 : index
    %49 = vector.load %arg3[%c0_61, %c0_62, %c0_63] : memref<1x4x256xf32, #tpu.memory_space<vmem>>, vector<1x4x256xf32>
    %50 = vector.shape_cast %49 : vector<1x4x256xf32> to vector<4x256xf32>
    %c1_64 = arith.constant 1 : index
    %c0_65 = arith.constant 0 : index
    %51 = vector.load %arg13[%c1_64, %c0_65] : memref<6x256xf32, #tpu.memory_space<vmem>>, vector<4x256xf32>
    tpu.vector_store %arg13[%c1_64, %c0_65], %50 {strides = array<i32>} : memref<6x256xf32, #tpu.memory_space<vmem>>, vector<4x256xf32>,
    %c0_66 = arith.constant 0 : index
    %c0_67 = arith.constant 0 : index
    %52 = vector.load %arg13[%c0_66, %c0_67] : memref<6x256xf32, #tpu.memory_space<vmem>>, vector<4x256xf32>
    %c0_68 = arith.constant 0 : index
    %c0_69 = arith.constant 0 : index
    %c0_70 = arith.constant 0 : index
    %53 = vector.load %arg6[%c0_68, %c0_69, %c0_70] : memref<3x256x128xf32, #tpu.memory_space<vmem>>, vector<1x256x128xf32>
    %54 = vector.shape_cast %53 : vector<1x256x128xf32> to vector<256x128xf32>
    %cst_71 = arith.constant dense<0.000000e+00> : vector<4x128xf32>
    %55 = tpu.matmul %52, %54, %cst_71 {dimension_numbers = #tpu.dot_dimension_numbers<[1], [0], [0], [1], [0, 0, 1, 1], [], []>} : vector<4x256xf32>, vector<256x128xf32>, vector<4x128xf32> -> vector<4x128xf32>
    %c1_72 = arith.constant 1 : index
    %c0_73 = arith.constant 0 : index
    %56 = vector.load %arg13[%c1_72, %c0_73] : memref<6x256xf32, #tpu.memory_space<vmem>>, vector<4x256xf32>
    %c1_74 = arith.constant 1 : index
    %c0_75 = arith.constant 0 : index
    %c0_76 = arith.constant 0 : index
    %57 = vector.load %arg6[%c1_74, %c0_75, %c0_76] : memref<3x256x128xf32, #tpu.memory_space<vmem>>, vector<1x256x128xf32>
    %58 = vector.shape_cast %57 : vector<1x256x128xf32> to vector<256x128xf32>
    %cst_77 = arith.constant dense<0.000000e+00> : vector<4x128xf32>
    %59 = tpu.matmul %56, %58, %cst_77 {dimension_numbers = #tpu.dot_dimension_numbers<[1], [0], [0], [1], [0, 0, 1, 1], [], []>} : vector<4x256xf32>, vector<256x128xf32>, vector<4x128xf32> -> vector<4x128xf32>
    %60 = arith.addf %55, %59 : vector<4x128xf32>
    %c2_78 = arith.constant 2 : index
    %c0_79 = arith.constant 0 : index
    %61 = vector.load %arg13[%c2_78, %c0_79] : memref<6x256xf32, #tpu.memory_space<vmem>>, vector<4x256xf32>
    %c2_80 = arith.constant 2 : index
    %c0_81 = arith.constant 0 : index
    %c0_82 = arith.constant 0 : index
    %62 = vector.load %arg6[%c2_80, %c0_81, %c0_82] : memref<3x256x128xf32, #tpu.memory_space<vmem>>, vector<1x256x128xf32>
    %63 = vector.shape_cast %62 : vector<1x256x128xf32> to vector<256x128xf32>
    %cst_83 = arith.constant dense<0.000000e+00> : vector<4x128xf32>
    %64 = tpu.matmul %61, %63, %cst_83 {dimension_numbers = #tpu.dot_dimension_numbers<[1], [0], [0], [1], [0, 0, 1, 1], [], []>} : vector<4x256xf32>, vector<256x128xf32>, vector<4x128xf32> -> vector<4x128xf32>
    %65 = arith.addf %60, %64 : vector<4x128xf32>
    %cst_84 = arith.constant dense<0.000000e+00> : vector<16x128xf32>
    %66 = tpu.matmul %45, %65, %cst_84 {dimension_numbers = #tpu.dot_dimension_numbers<[1], [0], [0], [1], [0, 0, 1, 1], [], []>} : vector<16x4xf32>, vector<4x128xf32>, vector<16x128xf32> -> vector<16x128xf32>
    %67 = arith.addf %44, %66 : vector<16x128xf32>
    %c0_85 = arith.constant 0 : index
    %c0_86 = arith.constant 0 : index
    %c0_87 = arith.constant 0 : index
    %68 = vector.load %arg10[%c0_85, %c0_86, %c0_87] : memref<1x16x128xf32, #tpu.memory_space<vmem>>, vector<1x16x128xf32>
    %69 = vector.shape_cast %68 : vector<1x16x128xf32> to vector<16x128xf32>
    %70 = vector.shape_cast %67 : vector<16x128xf32> to vector<1x16x128xf32>
    tpu.vector_store %arg10[%c0_85, %c0_86, %c0_87], %70 {strides = array<i32>} : memref<1x16x128xf32, #tpu.memory_space<vmem>>, vector<1x16x128xf32>,
    return
  }
  func.func @transform_0(%arg0: i32) -> (i32, i32, i32) {
    %c0_i32 = arith.constant 0 : i32
    %c0_i32_0 = arith.constant 0 : i32
    %c0_i32_1 = arith.constant 0 : i32
    return %arg0, %c0_i32, %c0_i32_0 : i32, i32, i32
  }
  func.func @transform_1(%arg0: i32) -> (i32, i32, i32) {
    %c0_i32 = arith.constant 0 : i32
    %c0_i32_0 = arith.constant 0 : i32
    %c0_i32_1 = arith.constant 0 : i32
    return %arg0, %c0_i32, %c0_i32_0 : i32, i32, i32
  }
  func.func @transform_2(%arg0: i32) -> (i32, i32, i32) {
    %c0_i32 = arith.constant 0 : i32
    %c0_i32_0 = arith.constant 0 : i32
    %c0_i32_1 = arith.constant 0 : i32
    return %arg0, %c0_i32, %c0_i32_0 : i32, i32, i32
  }
  func.func @transform_3(%arg0: i32) -> (i32, i32, i32) {
    %c0_i32 = arith.constant 0 : i32
    %c0_i32_0 = arith.constant 0 : i32
    %c0_i32_1 = arith.constant 0 : i32
    %c0_i32_2 = arith.constant 0 : i32
    return %c0_i32, %c0_i32_0, %c0_i32_1 : i32, i32, i32
  }
  func.func @transform_4(%arg0: i32) -> (i32, i32, i32) {
    %c0_i32 = arith.constant 0 : i32
    %c0_i32_0 = arith.constant 0 : i32
    %c0_i32_1 = arith.constant 0 : i32
    %c0_i32_2 = arith.constant 0 : i32
    return %c0_i32, %c0_i32_0, %c0_i32_1 : i32, i32, i32
  }
  func.func @transform_5(%arg0: i32) -> (i32, i32, i32) {
    %c0_i32 = arith.constant 0 : i32
    %c0_i32_0 = arith.constant 0 : i32
    %c0_i32_1 = arith.constant 0 : i32
    %c0_i32_2 = arith.constant 0 : i32
    return %c0_i32, %c0_i32_0, %c0_i32_1 : i32, i32, i32
  }
  func.func @transform_6(%arg0: i32) -> (i32, i32) {
    %c0_i32 = arith.constant 0 : i32
    %c0_i32_0 = arith.constant 0 : i32
    %c0_i32_1 = arith.constant 0 : i32
    return %c0_i32, %c0_i32_0 : i32, i32
  }
  func.func @transform_7(%arg0: i32) -> (i32, i32) {
    %c0_i32 = arith.constant 0 : i32
    %c0_i32_0 = arith.constant 0 : i32
    %c0_i32_1 = arith.constant 0 : i32
    return %c0_i32, %c0_i32_0 : i32, i32
  }
  func.func @transform_8(%arg0: i32) -> (i32, i32) {
    %c0_i32 = arith.constant 0 : i32
    %c0_i32_0 = arith.constant 0 : i32
    %c0_i32_1 = arith.constant 0 : i32
    return %c0_i32, %c0_i32_0 : i32, i32
  }
  func.func @transform_9(%arg0: i32) -> (i32, i32, i32) {
    %c0_i32 = arith.constant 0 : i32
    %c0_i32_0 = arith.constant 0 : i32
    %c0_i32_1 = arith.constant 0 : i32
    return %arg0, %c0_i32, %c0_i32_0 : i32, i32, i32
  }
}

</mosaic_0001>

<bundles_post_ra>
// kernel: tpu_custom_call.1
= control target key start
LH: loop header
LB: loop body
LE: loop exit
PB: predicated region body
PF: predicated region fallthrough
CT: control target
= control target key end

     0   :  { %s3224_s0 = inlined_call_operand.hbm [shape: f32[2,16,256], index: 0, kind: input, shape index: {}]   ;;  %s3225_s1 = inlined_call_operand.vmem [shape: f32[2,8,256], index: 1, kind: input, shape index: {}]   ;;  %s3226_s2 = inlined_call_operand.vmem [shape: f32[2,4,256], index: 2, kind: input, shape index: {}]   ;;  %s3227_s3 = inlined_call_operand.hbm [shape: f32[3,256,128], index: 3, kind: input, shape index: {}]   ;;  %s3228_s4 = inlined_call_operand.hbm [shape: f32[3,256,128], index: 4, kind: input, shape index: {}]   ;;  %s3229_s5 = inlined_call_operand.hbm [shape: f32[3,256,128], index: 5, kind: input, shape index: {}]   ;;  %s3230_s6 = inlined_call_operand.vmem [shape: f32[16,8], index: 6, kind: input, shape index: {}]   ;;  %s3231_s7 = inlined_call_operand.vmem [shape: f32[16,4], index: 7, kind: input, shape index: {}]   ;;  %s3232_s8 = inlined_call_operand.vmem [shape: f32[16,128], index: 8, kind: input, shape index: {}]   ;;  %s3233_s9 = inlined_call_operand.hbm [shape: f32[2,16,128], index: 9, kind: output, shape index: {}]  }
   0x1   :  { %3240 = sst [smem:[#allocation20_spill]] %s3233_s9 }
   0x2   :  { %14 = vsyncpa [#allocation6], 0 }
   0x3   :  { %16 = vsyncpa [#allocation6 + $0x1], 0 }
   0x4   :  { %17 = vsyncpa [#allocation9], 0 }
   0x5   :  { %18 = vsyncpa [#allocation12], 0 }
   0x6   :  { %19 = vsyncpa [#allocation7], 0 }
   0x7   :  { %21 = vsyncpa [#allocation7 + $0x1], 0  ;;  %s2873_s30 = smov 0   ;;  %s2875_s10 = smov 0  }
   0x8   :  { %s2877_s11 = smov 0   ;;  %s2879_s12 = smov 0  }
   0x9 LB: > { %3241 = sst [smem:[#allocation18_spill]] %s2797_s30  ;;  %s2894_s13 = sadd.s32 4294967295, %s2809_s12   ;;  %s2809_s12 = sphi %s2879_s12, %s3265_s12   ;;  %s2805_s11 = sphi %s2877_s11, %s3264_s11   ;;  %s2801_s10 = sphi %s2875_s10, %s3263_s10   ;;  %s2797_s30 = sphi %s2873_s30, %s3262_s30  }
   0xa   : > { %s1871_s14 = sadd.s32 4294967294, %s2809_s12   ;;  %p47_p0 = scmp.ne.s32.totalorder %s2801_s10, %s2797_s30 }
   0xb   : > { %p3234_p1 = scmp.eq.s32.totalorder %s2894_s13, 0  ;;  %p255_p3 = scmp.eq.s32.totalorder %s1871_s14, 1 }
   0xc   : > { %p1872_p5 = scmp.ge.s32.totalorder %s2809_s12, 1  ;;  %p262_p7 = scmp.lt.s32.totalorder %s2809_s12, 3 }
   0xd   : > { %p2903_p4 = por %p3234_p1, %p47_p0  ;;  %p2908_p6 = por %p255_p3, %p47_p0 }
   0xe   : > { %p2913_p8 = pnand %p1872_p5, %p262_p7  ;;  %s2811_s18 = smov [#allocation8]  }
   0xf   : > { %s3242_s15 = scalar_select %p2903_p4, 1, 0 }
  0x10   : > { %s3243_s16 = scalar_select %p2908_p6, 1, 0 }
  0x11   : > { %s3245_s17 = scalar_select %p2913_p8, 1, 0 }
  0x12   : > { %3244 = sst [smem:[#allocation19_spill]] %s3243_s16  ;;  %s274_s19 = sshll.u32 %s2811_s18, 4  ;;  %s2917_s19 = int_to_ptr.vmem [resolvable:$true] %s274_s19 }
  0x13   : > { %p2552_p9 = pneg %p2913_p8  ;;  %s2812_s21 = smov [#allocation10]  }
  0x14   : > { %s287_s22 = sshll.u32 %s2812_s21, 4  ;;  %s2813_s23 = smov [#allocation11]   ;;  %s2928_s22 = int_to_ptr.vmem [resolvable:$true] %s287_s22 }
  0x15   : > { %p2924_p11 = pnand %p2552_p9, %p3234_p1  ;;  %s2930_s24 = sshll.u32 %s2813_s23, 4  ;;  %s301_s24 = int_to_ptr.vmem [resolvable:$true] %s2930_s24 }
  0x16   : > { %s2621_s27 = scalar_lea.hbm %s3227_s3, 12288 }
  0x17   : > { %p2622_p12 = scmp.ne.s32.totalorder %s3227_s3, %s2621_s27  ;;  %p2940_p13 = pneg %p2924_p11 }
  0x18   : > { %p2628_p5 = scmp.lt.u32.totalorder %s2621_s27, %s3227_s3 }
  0x19   : > { %p2624_p0 = pnand %p2940_p13, %p2622_p12 }
  0x1b   : > { %p2625_p3 = pneg %p2624_p0 }
  0x1d   : > { %p2630_p7 = pnand %p2628_p5, %p2625_p3 }
  0x1f   : > { %2633 = shalt.err (!%p2630_p7)
}
  0x20   : > { %s2634_s23 = scalar_lea.vmem %s2917_s19, 12288  ;;  %p2642_p2 = scmp.lt.s32.totalorder %s2917_s19, %s2917_s19 }
  0x21   : > { %p2635_p9 = scmp.ne.s32.totalorder %s2917_s19, %s2634_s23  ;;  %p2643_p6 = scmp.lt.s32.totalorder %s2634_s23, %s2634_s23 }
  0x23   : > { %p2637_p10 = pnand %p2635_p9, %p2940_p13  ;;  %p2644_p12 = por %p2643_p6, %p2642_p2 }
  0x25   : > { %p2638_p1 = pneg %p2637_p10 }
  0x27   : > { %p2645_p0 = pnand %p2644_p12, %p2638_p1 }
  0x29   : > { %2648 = shalt.err (!%p2645_p0)
}
  0x2a   : > { %s2814_s25 = smov 128   ;;  %s2815_s26 = smov 8  }
  0x2b   : > { %2555 = dma.hbm_to_vmem [thread:$0]  (!%p2924_p11), %s3227_s3, 12288, %s2917_s19, [#allocation9], %s2814_s25, %s2814_s25, %s2815_s26  }
  0x2c   : > { %s2649_s21 = scalar_lea.hbm %s3228_s4, 12288 }
  0x2d   : > { %p2650_p1 = scmp.ne.s32.totalorder %s3228_s4, %s2649_s21  ;;  %p2656_p10 = scmp.lt.u32.totalorder %s2649_s21, %s3228_s4 }
  0x2f   : > { %p2652_p2 = pnand %p2650_p1, %p2940_p13 }
  0x31   : > { %p2653_p6 = pneg %p2652_p2 }
  0x33   : > { %p2658_p3 = pnand %p2656_p10, %p2653_p6 }
  0x35   : > { %2661 = shalt.err (!%p2658_p3)
}
  0x36   : > { %s2662_s19 = scalar_lea.vmem %s2928_s22, 12288  ;;  %p2670_p12 = scmp.lt.s32.totalorder %s2928_s22, %s2928_s22 }
  0x37   : > { %p2663_p5 = scmp.ne.s32.totalorder %s2928_s22, %s2662_s19  ;;  %p2671_p0 = scmp.lt.s32.totalorder %s2662_s19, %s2662_s19 }
  0x39   : > { %p2665_p7 = pnand %p2663_p5, %p2940_p13  ;;  %p2672_p1 = por %p2671_p0, %p2670_p12 }
  0x3b   : > { %p2666_p9 = pneg %p2665_p7 }
  0x3d   : > { %p2673_p2 = pnand %p2672_p1, %p2666_p9 }
  0x3f   : > { %2676 = shalt.err (!%p2673_p2)
}
  0x40   : > { %2558 = dma.hbm_to_vmem [thread:$0]  (!%p2924_p11), %s3228_s4, 12288, %s2928_s22, [#allocation9], %s2814_s25, %s2814_s25, %s2815_s26  }
  0x41   : > { %s2677_s28 = scalar_lea.hbm %s3229_s5, 12288 }
  0x42   : > { %p2678_p6 = scmp.ne.s32.totalorder %s3229_s5, %s2677_s28  ;;  %p2684_p5 = scmp.lt.u32.totalorder %s2677_s28, %s3229_s5 }
  0x44   : > { %p2680_p10 = pnand %p2678_p6, %p2940_p13 }
  0x46   : > { %p2681_p3 = pneg %p2680_p10 }
  0x48   : > { %p2686_p7 = pnand %p2684_p5, %p2681_p3 }
  0x4a   : > { %2689 = shalt.err (!%p2686_p7)
}
  0x4b   : > { %s2690_s19 = scalar_lea.vmem %s301_s24, 12288  ;;  %p2698_p1 = scmp.lt.s32.totalorder %s301_s24, %s301_s24 }
  0x4c   : > { %p2691_p9 = scmp.ne.s32.totalorder %s301_s24, %s2690_s19  ;;  %p2699_p2 = scmp.lt.s32.totalorder %s2690_s19, %s2690_s19 }
  0x4e   : > { %p2693_p12 = pnand %p2691_p9, %p2940_p13  ;;  %p2700_p4 = por %p2699_p2, %p2698_p1 }
  0x50   : > { %p2694_p0 = pneg %p2693_p12 }
  0x52   : > { %p2701_p8 = pnand %p2700_p4, %p2694_p0 }
  0x54   : > { %2704 = shalt.err (!%p2701_p8)
}
  0x55   : > { %2561 = dma.hbm_to_vmem [thread:$0]  (!%p2924_p11), %s3229_s5, 12288, %s301_s24, [#allocation12], %s2814_s25, %s2814_s25, %s2815_s26  }
  0x56   : > { %s3013_s14 = sadd.s32 1, %s2809_s12   ;;  %s34_s30 = sadd.s32 1, %s2805_s11 }
  0x57   : > { %s31_s20 = ssub.s32 %s2809_s12, %s3013_s14  ;;  %p41_p8 = scmp.ne.s32.totalorder %s2805_s11, %s2801_s10 }
  0x58   : > { %p32_p4 = scmp.eq.s32.totalorder %s31_s20, 0  ;;  %p42_p13 = scmp.eq.s32.totalorder %s2809_s12, 0 }
  0x59   : > { %p2573_p6 = scmp.lt.s32.totalorder %s2809_s12, 2  ;;  %p3248_p3 = scmp.eq.s32.totalorder %s2894_s13, 1 }
  0x5a   : > { %s3023_s16 = scalar_select %p32_p4, %s2805_s11, %s34_s30  }
  0x5b   : > { %p43_p10 = por %p42_p13, %p41_p8  ;;  %p3027_p5 = por %p3248_p3, %p41_p8 }
  0x5c   : > { %s323_s28 = sand.u32 1, %s2805_s11   ;;  %s1900_s29 = sshll.u32 %s2809_s12, 9 }
  0x5d   : > { %s1877_s24 = sshll.u32 %s323_s28, 5  ;;  %s3036_s18 = scalar_lea.hbm %s3224_s0, %s1900_s29 }
  0x5e   : > { %s327_s21 = scalar_lea.vmem [#allocation5], %s1877_s24  ;;  %p3038_p11 = pnand %p2573_p6, %p43_p10 }
  0x5f   : > { %s334_s23 = sshll.u32 %s327_s21, 4  ;;  %s3044_s22 = scalar_lea.sflag [#allocation6], %s323_s28  ;;  %s3042_s23 = int_to_ptr.vmem [resolvable:$true] %s334_s23 }
  0x60   : > { %s2705_s9 = scalar_lea.hbm %s3036_s18, 512  ;;  %p2707_p9 = pneg %p3038_p11 }
  0x61   : > { %p2706_p7 = scmp.ne.s32.totalorder %s3036_s18, %s2705_s9  ;;  %s2710_s29 = scalar_lea.hbm %s3224_s0, 1024 }
  0x62   : > { %p2711_p1 = scmp.lt.u32.totalorder %s3036_s18, %s3224_s0  ;;  %p2712_p2 = scmp.lt.u32.totalorder %s2710_s29, %s2705_s9 }
  0x63   : > { %p2708_p12 = pnand %p2707_p9, %p2706_p7  ;;  %p2714_p8 = scmp.lt.u32.totalorder %s2705_s9, %s3036_s18 }
  0x64   : > { %p2713_p4 = por %p2712_p2, %p2711_p1 }
  0x65   : > { %p2709_p0 = pneg %p2708_p12 }
  0x66   : > { %p2715_p13 = por %p2714_p8, %p2713_p4 }
  0x68   : > { %p2716_p6 = pnand %p2715_p13, %p2709_p0 }
  0x6a   : > { %2719 = shalt.err (!%p2716_p6)
}
  0x6b   : > { %s2720_s28 = scalar_lea.vmem %s3042_s23, 512  ;;  %s2816_s26 = smov [#allocation5]  }
  0x6c   : > { %p2721_p10 = scmp.ne.s32.totalorder %s3042_s23, %s2720_s28  ;;  %s2725_s21 = sshll.u32 %s2816_s26, 4  ;;  %s2726_s21 = int_to_ptr.vmem [resolvable:$false] %s2725_s21 }
  0x6d   : > { %s2727_s20 = scalar_lea.vmem %s2726_s21, 1024  ;;  %p2728_p12 = scmp.lt.s32.totalorder %s3042_s23, %s2726_s21 }
  0x6e   : > { %p2723_p3 = pnand %p2721_p10, %p2707_p9  ;;  %p2729_p1 = scmp.lt.s32.totalorder %s2727_s20, %s2720_s28 }
  0x70   : > { %p2724_p7 = pneg %p2723_p3  ;;  %p2730_p2 = por %p2729_p1, %p2728_p12 }
  0x72   : > { %p2731_p4 = pnand %p2730_p2, %p2724_p7 }
  0x74   : > { %2734 = shalt.err (!%p2731_p4)
}
  0x75   : > { %s2817_s9 = smov 256   ;;  %s2818_s30 = smov 16  }
  0x76   : > { %2565 = dma.hbm_to_vmem [thread:$0]  (!%p3038_p11), %s3036_s18, 512, %s3042_s23, %s3044_s22, %s2817_s9, %s2817_s9, %s2818_s30  }
  0x77   : > { %p3251_p9 = scmp.ne.s32.totalorder %s3245_s17, 0 }
  0x78   : > { %s3075_s29 = sand.u32 (!%p3251_p9), 1, %s2801_s10   ;;  %p3252_p0 = scmp.ne.s32.totalorder (!%p3251_p9), %s3242_s15, 0 }
  0x79   : > { %362 = sbr.rel (%p3251_p9) target bundleno = 942 (0x3ae), region = 56  ;;  %s1881_s24 = sshll.u32 (!%p3251_p9), %s3075_s29, 5 }
  0x7a   : > { %s365_s25 = scalar_lea.sflag (!%p3251_p9), [#allocation6], %s3075_s29  ;;  %s3079_s28 = scalar_lea.vmem (!%p3251_p9), [#allocation5], %s1881_s24 }
  0x80   : > { %2780 = dma.done.wait (%p3252_p0), %s365_s25, 512  }
  0x81   : > { %2782 = vsyncadd (%p3252_p0), %s365_s25, 4294966784  ;;  %p3253_p11 = scmp.eq.s32.totalorder %s2894_s13, 0 }
  0x83   : > { %2784 = dma.done.wait (%p3253_p11), [#allocation9], 24576   ;;  %p3254_p8 = pmov %p3253_p11 }
  0x85   : > { %2786 = vsyncadd (%p3254_p8), [#allocation9], 4294942720  ;;  %p3255_p13 = pmov %p3254_p8 }
  0x86   : > { %p3256_p6 = pmov %p3254_p8 }
  0x87   : > { %2788 = dma.done.wait (%p3255_p13), [#allocation12], 12288  }
  0x88   : > { %2790 = vsyncadd (%p3256_p6), [#allocation12], 4294955008  ;;  %v437_v0 = vlaneseq  ;;  %v2819_v1 = vmov 0.0   ;;  %v530_v2 = vld [vmem:[#allocation8 + $0x180] sm:$0xff]  ;;  %v531_v3 = vld [vmem:[#allocation8 + $0x188] sm:$0xff]  ;;  %vm454_vm1 = vcmask 1040384  }
  0x89   : > { %v493_v4 = vld [vmem:[#allocation8 + $0x80] sm:$0xff]  ;;  %v2244_v5 = vpack.c.bf16 %v531_v3, %v530_v2  ;;  %v494_v6 = vld [vmem:[#allocation8 + $0x88] sm:$0xff]  ;;  %v532_v13 = vld [vmem:[#allocation8 + $0x190] sm:$0xff]  ;;  %vm552_vm2 = vcmask 1046528   ;;  %p425_p10 = scmp.lt.s32.totalorder %s2894_s13, 1  ;;  %vm758_vm3 = vcmask 1045504  }
  0x8a   : > { %vm439_vm0 = vcmp.lt.s32.totalorder %v437_v0, 256  ;;  %v514_v7 = vld [vmem:[#allocation8 + $0x100] sm:$0xff]  ;;  %v515_v8 = vld [vmem:[#allocation8 + $0x108] sm:$0xff]  ;;  %v2276_v9 = vpack.c.bf16 %v494_v6, %v493_v4  ;;  %v533_v15 = vld [vmem:[#allocation8 + $0x198] sm:$0xff]  ;;  %vm1214_vm4 = vcmask 64512   ;;  %vm1641_vm5 = vcmask 31744  }
  0x8b   : > { %441 = vst.msk [vmem:[#allocation2] ss:$8 sm:$0x3] %vm439_vm0, %v2819_v1  ;;  %444 = vst.msk [vmem:[#allocation2 + $0x21] ss:$8 sm:$0x3] %vm439_vm0, %v2819_v1  ;;  %v2246_v10 = vpack.c.bf16 %v515_v8, %v514_v7  ;;  %2245 = vmatprep.subr.bf16.mxu0 %v2244_v5  ;;  %v2248_v18 = vpack.c.bf16 %v533_v15, %v532_v13 }
  0x8c   : > { %854 = vst.msk [vmem:[#allocation3] ss:$8 sm:$0x3] %vm439_vm0, %v2819_v1  ;;  %857 = vst.msk [vmem:[#allocation3 + $0x11] ss:$8 sm:$0x3] %vm439_vm0, %v2819_v1  ;;  %2277 = vmatprep.subr.bf16.mxu1 %v2276_v9 }
  0x8d   : > { %1300 = vst.msk [vmem:[#allocation4] ss:$8 sm:$0x3] %vm439_vm0, %v2819_v1  ;;  %1303 = vst.msk [vmem:[#allocation4 + $0x5] ss:$8 sm:$0x3] %vm439_vm0, %v2819_v1  ;;  %2247 = vmatpush3.bf16.msra.mxu0 %v2246_v10 }
  0x8e   : > { %v477_v11 = vld [vmem:[#allocation8] sm:$0xff]  ;;  %v478_v12 = vld [vmem:[#allocation8 + $0x8] sm:$0xff]  ;;  %v495_v16 = vld [vmem:[#allocation8 + $0x90] sm:$0xff]  ;;  %2249 = vmatprep.subr.bf16.mxu0 %v2248_v18  ;;  %s3115_s15 = scalar_select %p425_p10, %s2894_s13, 1  ;;  %vm1648_vm6 = vcmask 1043456  }
  0x8f   : > { %v2278_v14 = vpack.c.bf16 %v478_v12, %v477_v11  ;;  %v496_v17 = vld [vmem:[#allocation8 + $0x98] sm:$0xff]  ;;  %v516_v20 = vld [vmem:[#allocation8 + $0x110] sm:$0xff]  ;;  %v534_v25 = vld [vmem:[#allocation8 + $0x1a0] sm:$0xff]  ;;  %s1885_s23 = sshll.u32 %s3075_s29, 4  ;;  %s1903_s30 = sshll.u32 %s2894_s13, 8 }
  0x90   : > { %v2280_v19 = vpack.c.bf16 %v496_v17, %v495_v16  ;;  %v517_v21 = vld [vmem:[#allocation8 + $0x118] sm:$0xff]  ;;  %v479_v22 = vld [vmem:[#allocation8 + $0x10] sm:$0xff]  ;;  %v535_v26 = vld [vmem:[#allocation8 + $0x1a8] sm:$0xff]  ;;  %s1901_s17 = sshll.u32 %s3115_s15, 4  ;;  %s1902_s22 = sshll.u32 %s3115_s15, 3 }
  0x91   : > { %2279 = vmatpush3.bf16.msra.mxu1 %v2278_v14  ;;  %v2250_v23 = vpack.c.bf16 %v517_v21, %v516_v20  ;;  %v480_v24 = vld [vmem:[#allocation8 + $0x18] sm:$0xff]  ;;  %v2252_v28 = vpack.c.bf16 %v535_v26, %v534_v25  ;;  %v497_v29 = vld [vmem:[#allocation8 + $0xa0] sm:$0xff]  ;;  %v498_v30 = vld [vmem:[#allocation8 + $0xa8] sm:$0xff]  ;;  %s429_s19 = scalar_lea.vmem %s3225_s1, %s1901_s17  ;;  %s434_s20 = scalar_lea.vmem %s3226_s2, %s1902_s22 }
  0x92   : > { %2281 = vmatprep.subr.bf16.mxu1 %v2280_v19  ;;  %v2282_v27 = vpack.c.bf16 %v480_v24, %v479_v22  ;;  %v518_v31 = vld [vmem:[#allocation8 + $0x120] sm:$0xff]  ;;  %v2284_v32 = vpack.c.bf16 %v498_v30, %v497_v29  ;;  %v519_v33 = vld [vmem:[#allocation8 + $0x128] sm:$0xff]  ;;  %v536_v37 = vld [vmem:[#allocation8 + $0x1b0] sm:$0xff]  ;;  %s424_s26 = scalar_lea.vmem [#allocation13], %s1885_s23  ;;  %s1732_s13 = scalar_lea.sflag [#allocation7], %s3075_s29 }
  0x93   : > { %v481_v34 = vld [vmem:[#allocation8 + $0x20] sm:$0xff]  ;;  %v482_v35 = vld [vmem:[#allocation8 + $0x28] sm:$0xff]  ;;  %2251 = vmatpush3.bf16.msra.mxu0 %v2250_v23  ;;  %v2254_v36 = vpack.c.bf16 %v519_v33, %v518_v31  ;;  %v537_v38 = vld [vmem:[#allocation8 + $0x1b8] sm:$0xff]  ;;  %s1745_s21 = sshll.u32 %s424_s26, 4  ;;  %s2820_s18 = smov [#allocation13]   ;;  %s3174_s21 = int_to_ptr.vmem [resolvable:$true] %s1745_s21 }
  0x94   : > { %v499_v39 = vld [vmem:[#allocation8 + $0xb0] sm:$0xff]  ;;  %2253 = vmatprep.subr.bf16.mxu0 %v2252_v28  ;;  %v2286_v40 = vpack.c.bf16 %v482_v35, %v481_v34  ;;  %v2256_v41 = vpack.c.bf16 %v537_v38, %v536_v37  ;;  %v500_v42 = vld [vmem:[#allocation8 + $0xb8] sm:$0xff]  ;;  %v538_v48 = vld [vmem:[#allocation8 + $0x1c0] sm:$0xff]  ;;  %s2735_s17 = scalar_lea.vmem %s3174_s21, 256  ;;  %s2739_s23 = sshll.u32 %s2820_s18, 4  ;;  %s2740_s23 = int_to_ptr.vmem [resolvable:$false] %s2739_s23 }
  0x95   : > { %2283 = vmatpush3.bf16.msra.mxu1 %v2282_v27  ;;  %v520_v43 = vld [vmem:[#allocation8 + $0x130] sm:$0xff]  ;;  %v521_v44 = vld [vmem:[#allocation8 + $0x138] sm:$0xff]  ;;  %v2288_v45 = vpack.c.bf16 %v500_v42, %v499_v39  ;;  %v539_v49 = vld [vmem:[#allocation8 + $0x1c8] sm:$0xff]  ;;  %p2736_p3 = scmp.ne.s32.totalorder %s3174_s21, %s2735_s17  ;;  %p2742_p1 = scmp.lt.s32.totalorder %s3174_s21, %s2740_s23 }
  0x96   : > { %2285 = vmatprep.subr.bf16.mxu1 %v2284_v32  ;;  %v483_v46 = vld [vmem:[#allocation8 + $0x30] sm:$0xff]  ;;  %v484_v47 = vld [vmem:[#allocation8 + $0x38] sm:$0xff]  ;;  %v501_v50 = vld [vmem:[#allocation8 + $0xc0] sm:$0xff]  ;;  %v2258_v52 = vpack.c.bf16 %v521_v44, %v520_v43  ;;  %v2260_v54 = vpack.c.bf16 %v539_v49, %v538_v48 }
  0x97   : > { %v502_v51 = vld [vmem:[#allocation8 + $0xc8] sm:$0xff]  ;;  %2255 = vmatpush3.bf16.msra.mxu0 %v2254_v36  ;;  %v2290_v53 = vpack.c.bf16 %v484_v47, %v483_v46  ;;  %v522_v55 = vld [vmem:[#allocation8 + $0x140] sm:$0xff]  ;;  %v540_v60 = vld [vmem:[#allocation8 + $0x1d0] sm:$0xff]  ;;  %p2737_p7 = pnand %p2736_p3, %p3027_p5 }
  0x98   : > { %2257 = vmatprep.subr.bf16.mxu0 %v2256_v41  ;;  %v523_v56 = vld [vmem:[#allocation8 + $0x148] sm:$0xff]  ;;  %v485_v57 = vld [vmem:[#allocation8 + $0x40] sm:$0xff]  ;;  %v2292_v58 = vpack.c.bf16 %v502_v51, %v501_v50  ;;  %v541_v61 = vld [vmem:[#allocation8 + $0x1d8] sm:$0xff] }
  0x99   : > { %2287 = vmatpush3.bf16.msra.mxu1 %v2286_v40  ;;  %v486_v59 = vld [vmem:[#allocation8 + $0x48] sm:$0xff]  ;;  %v503_v62 = vld [vmem:[#allocation8 + $0xd0] sm:$0xff]  ;;  %v504_v63 = vld [vmem:[#allocation8 + $0xd8] sm:$0xff]  ;;  %v2262_v0 = vpack.c.bf16 %v523_v56, %v522_v55  ;;  %v2264_v2 = vpack.c.bf16 %v541_v61, %v540_v60  ;;  %p2738_p12 = pneg %p2737_p7 }
  0x9a   : > { %2289 = vmatprep.subr.bf16.mxu1 %v2288_v45  ;;  %v2294_v1 = vpack.c.bf16 %v486_v59, %v485_v57  ;;  %v524_v3 = vld [vmem:[#allocation8 + $0x150] sm:$0xff]  ;;  %v525_v4 = vld [vmem:[#allocation8 + $0x158] sm:$0xff]  ;;  %v2296_v6 = vpack.c.bf16 %v504_v63, %v503_v62  ;;  %v542_v8 = vld [vmem:[#allocation8 + $0x1e0] sm:$0xff] }
  0x9b   : > { %2259 = vmatpush3.bf16.msra.mxu0 %v2258_v52  ;;  %v487_v5 = vld [vmem:[#allocation8 + $0x50] sm:$0xff]  ;;  %v488_v7 = vld [vmem:[#allocation8 + $0x58] sm:$0xff]  ;;  %v543_v9 = vld [vmem:[#allocation8 + $0x1e8] sm:$0xff]  ;;  %v2266_v13 = vpack.c.bf16 %v525_v4, %v524_v3 }
  0x9c   : > { %2261 = vmatprep.subr.bf16.mxu0 %v2260_v54  ;;  %v505_v10 = vld [vmem:[#allocation8 + $0xe0] sm:$0xff]  ;;  %v506_v11 = vld [vmem:[#allocation8 + $0xe8] sm:$0xff]  ;;  %v2298_v17 = vpack.c.bf16 %v488_v7, %v487_v5  ;;  %v2268_v18 = vpack.c.bf16 %v543_v9, %v542_v8  ;;  %v544_v19 = vld [vmem:[#allocation8 + $0x1f0] sm:$0xff] }
  0x9d   : > { %2291 = vmatpush3.bf16.msra.mxu1 %v2290_v53  ;;  %v526_v12 = vld [vmem:[#allocation8 + $0x160] sm:$0xff]  ;;  %v527_v14 = vld [vmem:[#allocation8 + $0x168] sm:$0xff]  ;;  %v449_v21 = vld [vmem:[%s3079_s28 + $0x18] sm:$0xff]  ;;  %v2300_v22 = vpack.c.bf16 %v506_v11, %v505_v10 }
  0x9e   : > { %2293 = vmatprep.subr.bf16.mxu1 %v2292_v58  ;;  %v489_v15 = vld [vmem:[#allocation8 + $0x60] sm:$0xff]  ;;  %v490_v16 = vld [vmem:[#allocation8 + $0x68] sm:$0xff]  ;;  %v545_v23 = vld [vmem:[#allocation8 + $0x1f8] sm:$0xff]  ;;  %v459_v25 = vrot.slane %v449_v21, 7  ;;  %v2270_v32 = vpack.c.bf16 %v527_v14, %v526_v12 }
  0x9f   : > { %2263 = vmatpush3.bf16.msra.mxu0 %v2262_v0  ;;  %v447_v20 = vld [vmem:[%s3079_s28 + $0x8] sm:$0xff]  ;;  %v446_v26 = vld [vmem:[%s3079_s28] sm:$0xff]  ;;  %v448_v27 = vld [vmem:[%s3079_s28 + $0x10] sm:$0xff]  ;;  %v2302_v34 = vpack.c.bf16 %v490_v16, %v489_v15  ;;  %v2272_v35 = vpack.c.bf16 %v545_v23, %v544_v19  ;;  %s3257_s28 = sld [smem:[#allocation20_spill]] }
  0xa0   : > { %2265 = vmatprep.subr.bf16.mxu0 %v2264_v2  ;;  %v456_v24 = vrot.slane %v447_v20, 7  ;;  %v507_v28 = vld [vmem:[#allocation8 + $0xf0] sm:$0xff]  ;;  %v508_v29 = vld [vmem:[#allocation8 + $0xf8] sm:$0xff]  ;;  %v455_v30 = vrot.slane %v446_v26, 7  ;;  %v457_v31 = vrot.slane %v448_v27, 7  ;;  %v738_v42 = vld [vmem:[#allocation8 + $0x280] sm:$0xff] }
  0xa1   : > { %2295 = vmatpush3.bf16.msra.mxu1 %v2294_v1  ;;  %472 = vst [vmem:[#allocation2 + $0x28] sm:$0x1] %v459_v25  ;;  %v528_v36 = vld [vmem:[#allocation8 + $0x170] sm:$0xff]  ;;  %v529_v37 = vld [vmem:[#allocation8 + $0x178] sm:$0xff]  ;;  %v2304_v40 = vpack.c.bf16 %v508_v29, %v507_v28  ;;  %v739_v43 = vld [vmem:[#allocation8 + $0x288] sm:$0xff] }
  0xa2   : > { %2297 = vmatprep.subr.bf16.mxu1 %v2296_v6  ;;  %v3098_v33 = vsel %vm454_vm1, %v456_v24, %v459_v25  ;;  %468 = vst [vmem:[#allocation2 + $0x8] sm:$0xfe] %v456_v24  ;;  %v491_v38 = vld [vmem:[#allocation8 + $0x70] sm:$0xff]  ;;  %v3101_v39 = vsel %vm454_vm1, %v455_v30, %v457_v31  ;;  %467 = vst [vmem:[#allocation2] sm:$0xfe] %v455_v30  ;;  %v492_v41 = vld [vmem:[#allocation8 + $0x78] sm:$0xff]  ;;  %v2274_v46 = vpack.c.bf16 %v529_v37, %v528_v36 }
  0xa3   : > { %2267 = vmatpush3.bf16.msra.mxu0 %v2266_v13  ;;  %471 = vst [vmem:[#allocation2 + $0x20] sm:$0x1] %v457_v31  ;;  %v926_v44 = vld [vmem:[#allocation10 + $0x180] sm:$0xff]  ;;  %v927_v45 = vld [vmem:[#allocation10 + $0x188] sm:$0xff]  ;;  %v2306_v48 = vpack.c.bf16 %v492_v41, %v491_v38  ;;  %v2308_v49 = vpack.c.bf16 %v739_v43, %v738_v42  ;;  %v557_v53 = vrot.slane %v3098_v33, 1  ;;  %v740_v55 = vld [vmem:[#allocation8 + $0x290] sm:$0xff] }
  0xa4   : > { %2269 = vmatprep.subr.bf16.mxu0 %v2268_v18  ;;  %v722_v47 = vld [vmem:[#allocation8 + $0x200] sm:$0xff]  ;;  %v723_v50 = vld [vmem:[#allocation8 + $0x208] sm:$0xff]  ;;  %v2340_v54 = vpack.c.bf16 %v927_v45, %v926_v44  ;;  %v741_v56 = vld [vmem:[#allocation8 + $0x298] sm:$0xff]  ;;  %v554_v60 = vrot.slane %v3101_v39, 1 }
  0xa5   : > { %2299 = vmatpush3.bf16.msra.mxu1 %v2298_v17  ;;  %v910_v51 = vld [vmem:[#allocation10 + $0x100] sm:$0xff]  ;;  %v911_v52 = vld [vmem:[#allocation10 + $0x108] sm:$0xff]  ;;  %v928_v57 = vld [vmem:[#allocation10 + $0x190] sm:$0xff]  ;;  %v2310_v2 = vpack.c.bf16 %v723_v50, %v722_v47  ;;  %v2312_v7 = vpack.c.bf16 %v741_v56, %v740_v55  ;;  %v763_v55 = vrot.slane %v3098_v33, 2  ;;  %s3180_s15 = scalar_lea.hbm %s3257_s28, %s1903_s30 }
  0xa6   : > { %2301 = vmatprep.subr.bf16.mxu1 %v2300_v22  ;;  %v929_v61 = vld [vmem:[#allocation10 + $0x198] sm:$0xff]  ;;  %v2342_v3 = vpack.c.bf16 %v911_v52, %v910_v51  ;;  %v724_v4 = vld [vmem:[#allocation8 + $0x210] sm:$0xff]  ;;  %v742_v11 = vld [vmem:[#allocation8 + $0x2a0] sm:$0xff] }
  0xa7   : > { %2271 = vmatpush3.bf16.msra.mxu0 %v2270_v32  ;;  %v725_v5 = vld [vmem:[#allocation8 + $0x218] sm:$0xff]  ;;  %v2344_v8 = vpack.c.bf16 %v929_v61, %v928_v57  ;;  %v912_v9 = vld [vmem:[#allocation10 + $0x110] sm:$0xff]  ;;  %v743_v13 = vld [vmem:[#allocation8 + $0x2a8] sm:$0xff] }
  0xa8   : > { %2273 = vmatprep.subr.bf16.mxu0 %v2272_v35  ;;  %v913_v10 = vld [vmem:[#allocation10 + $0x118] sm:$0xff]  ;;  %v930_v14 = vld [vmem:[#allocation10 + $0x1a0] sm:$0xff]  ;;  %v931_v15 = vld [vmem:[#allocation10 + $0x1a8] sm:$0xff]  ;;  %v2314_v16 = vpack.c.bf16 %v725_v5, %v724_v4  ;;  %v2316_v20 = vpack.c.bf16 %v743_v13, %v742_v11 }
  0xa9   : > { %2303 = vmatpush3.bf16.msra.mxu1 %v2302_v34  ;;  %v510_v58 = vld [vmem:[#allocation2 + $0x8] sm:$0xfe]  ;;  %v509_v63 = vld [vmem:[#allocation2] sm:$0xfe]  ;;  %v2346_v17 = vpack.c.bf16 %v913_v10, %v912_v9  ;;  %v2348_v21 = vpack.c.bf16 %v931_v15, %v930_v14  ;;  %v744_v24 = vld [vmem:[#allocation8 + $0x2b0] sm:$0xff] }
  0xaa   : > { %2305 = vmatprep.subr.bf16.mxu1 %v2304_v40  ;;  %v474_v59 = vld [vmem:[#allocation2 + $0x8] sm:$0xff]  ;;  %v556_v62 = vrot.slane %v510_v58, 1  ;;  %v553_v0 = vrot.slane %v509_v63, 1  ;;  %v473_v1 = vld [vmem:[#allocation2] sm:$0xff]  ;;  %v745_v25 = vld [vmem:[#allocation8 + $0x2b8] sm:$0xff] }
  0xab   : > { %2275 = vmatpush3.bf16.msra.mxu0 %v2274_v46  ;;  %706 = vmatprep.mubr.f32.mxu1 %v474_v59  ;;  %v726_v18 = vld [vmem:[#allocation8 + $0x220] sm:$0xff]  ;;  %v727_v19 = vld [vmem:[#allocation8 + $0x228] sm:$0xff]  ;;  %v932_v26 = vld [vmem:[#allocation10 + $0x1b0] sm:$0xff]  ;;  %v2320_v35 = vpack.c.bf16 %v745_v25, %v744_v24 }
  0xac   : > { %2309 = vmatprep.subr.bf16.mxu0 %v2308_v49  ;;  %v558_v6 = vsel %vm552_vm2, %v556_v62, %v557_v53  ;;  %v555_v12 = vsel %vm552_vm2, %v553_v0, %v554_v60  ;;  %v914_v22 = vld [vmem:[#allocation10 + $0x120] sm:$0xff]  ;;  %v915_v23 = vld [vmem:[#allocation10 + $0x128] sm:$0xff]  ;;  %v933_v27 = vld [vmem:[#allocation10 + $0x1b8] sm:$0xff]  ;;  %v2318_v29 = vpack.c.bf16 %v727_v19, %v726_v18 }
  0xad   : > { %2307 = vmatpush3.bf16.msra.mxu1 %v2306_v48  ;;  %631 = vmatprep.mubr.f32.mxu0 %v558_v6  ;;  %v728_v28 = vld [vmem:[#allocation8 + $0x230] sm:$0xff]  ;;  %v2350_v30 = vpack.c.bf16 %v915_v23, %v914_v22  ;;  %v729_v31 = vld [vmem:[#allocation8 + $0x238] sm:$0xff]  ;;  %v2352_v36 = vpack.c.bf16 %v933_v27, %v932_v26  ;;  %v746_v37 = vld [vmem:[#allocation8 + $0x2c0] sm:$0xff] }
  0xae   : > { %2341 = vmatprep.subr.bf16.mxu1 %v2340_v54  ;;  %632 = vmatmul.mubr.f32.vlgmr.msra.gmra.mrb[0].mxu0 %v555_v12  ;;  %v916_v32 = vld [vmem:[#allocation10 + $0x130] sm:$0xff]  ;;  %v917_v34 = vld [vmem:[#allocation10 + $0x138] sm:$0xff]  ;;  %v747_v38 = vld [vmem:[#allocation8 + $0x2c8] sm:$0xff]  ;;  %v2322_v48 = vpack.c.bf16 %v729_v31, %v728_v28 }
  0xaf   : > { %2311 = vmatpush3.bf16.msra.mxu0 %v2310_v2  ;;  %v512_v40 = vld [vmem:[#allocation2 + $0x28] sm:$0x1]  ;;  %v934_v41 = vld [vmem:[#allocation10 + $0x1c0] sm:$0xff]  ;;  %v2354_v49 = vpack.c.bf16 %v917_v34, %v916_v32  ;;  %v748_v52 = vld [vmem:[#allocation8 + $0x2d0] sm:$0xff]  ;;  %v2324_v56 = vpack.c.bf16 %v747_v38, %v746_v37 }
  0xb0   : > { %707 = vmatmul.mubr.f32.vlgmr.msra.gmra.mrb[0].mxu1 %v473_v1  ;;  %2313 = vmatprep.subr.bf16.mxu0 %v2312_v7  ;;  %v935_v42 = vld [vmem:[#allocation10 + $0x1c8] sm:$0xff]  ;;  %v561_v43 = vrot.slane %v512_v40, 1  ;;  %v511_v44 = vld [vmem:[#allocation2 + $0x20] sm:$0x1]  ;;  %v749_v58 = vld [vmem:[#allocation8 + $0x2d8] sm:$0xff] }
  0xb1   : > { %2343 = vmatpush3.bf16.msra.mxu1 %v2342_v3  ;;  %711 = vmatprep.mubr.f32.mxu1 %v3098_v33  ;;  %v730_v45 = vld [vmem:[#allocation8 + $0x240] sm:$0xff]  ;;  %v731_v46 = vld [vmem:[#allocation8 + $0x248] sm:$0xff]  ;;  %v559_v47 = vrot.slane %v511_v44, 1  ;;  %v2356_v57 = vpack.c.bf16 %v935_v42, %v934_v41  ;;  %v936_v59 = vld [vmem:[#allocation10 + $0x1d0] sm:$0xff] }
  0xb2   : > { %2345 = vmatprep.subr.bf16.mxu1 %v2344_v8  ;;  %v918_v50 = vld [vmem:[#allocation10 + $0x140] sm:$0xff]  ;;  %v919_v51 = vld [vmem:[#allocation10 + $0x148] sm:$0xff]  ;;  %v562_v54 = vsel %vm552_vm2, %v557_v53, %v561_v43  ;;  %v937_v63 = vld [vmem:[#allocation10 + $0x1d8] sm:$0xff]  ;;  %v2326_v4 = vpack.c.bf16 %v731_v46, %v730_v45  ;;  %v2328_v8 = vpack.c.bf16 %v749_v58, %v748_v52 }
  0xb3   : > { %2315 = vmatpush3.bf16.msra.mxu0 %v2314_v16  ;;  %v560_v61 = vsel %vm552_vm2, %v554_v60, %v559_v47  ;;  %v718_v62 = vld [vmem:[#allocation2 + $0x8] sm:$0xfc]  ;;  %636 = vmatprep.mubr.f32.mxu0 %v562_v54  ;;  %v859_v1 = vld [vmem:[%s429_s19] sm:$0xff]  ;;  %v2358_v5 = vpack.c.bf16 %v919_v51, %v918_v50  ;;  %v732_v6 = vld [vmem:[#allocation8 + $0x250] sm:$0xff]  ;;  %v2360_v9 = vpack.c.bf16 %v937_v63, %v936_v59  ;;  %v760_v50 = vrot.slane %v3101_v39, 2 }
  0xb4   : > { %712 = vmatmul.mubr.f32.gmra.mrb[2].mxu1 %v3101_v39  ;;  %2317 = vmatprep.subr.bf16.mxu0 %v2316_v20  ;;  %v762_v0 = vrot.slane %v718_v62, 2  ;;  %v860_v2 = vld [vmem:[%s429_s19 + $0x8] sm:$0xff]  ;;  %v863_v53 = vrot.slane %v859_v1, 7  ;;  %v733_v7 = vld [vmem:[#allocation8 + $0x258] sm:$0xff]  ;;  %v920_v10 = vld [vmem:[#allocation10 + $0x150] sm:$0xff]  ;;  %s2741_s19 = scalar_lea.vmem %s2740_s23, 512 }
  0xb5   : > { %2347 = vmatpush3.bf16.msra.mxu1 %v2346_v17  ;;  %637 = vmatmul.mubr.f32.gmra.mrb[2].mxu0 %v560_v61  ;;  %v864_v3 = vrot.slane %v860_v2, 7  ;;  %v921_v11 = vld [vmem:[#allocation10 + $0x158] sm:$0xff]  ;;  %v750_v12 = vld [vmem:[#allocation8 + $0x2e0] sm:$0xff]  ;;  %v751_v13 = vld [vmem:[#allocation8 + $0x2e8] sm:$0xff]  ;;  %v2330_v16 = vpack.c.bf16 %v733_v7, %v732_v6  ;;  %p2743_p2 = scmp.lt.s32.totalorder %s2741_s19, %s2735_s17 }
  0xb6   : > { %2349 = vmatprep.subr.bf16.mxu1 %v2348_v21  ;;  %v764_v60 = vsel %vm758_vm3, %v762_v0, %v763_v55  ;;  %867 = vst [vmem:[#allocation3] sm:$0xfe] %v863_v53  ;;  %869 = vst [vmem:[#allocation3 + $0x10] sm:$0x1] %v863_v53  ;;  %v938_v14 = vld [vmem:[#allocation10 + $0x1e0] sm:$0xff]  ;;  %v939_v15 = vld [vmem:[#allocation10 + $0x1e8] sm:$0xff]  ;;  %v2362_v17 = vpack.c.bf16 %v921_v11, %v920_v10  ;;  %v2332_v20 = vpack.c.bf16 %v751_v13, %v750_v12 }
  0xb7   : > { %2319 = vmatpush3.bf16.msra.mxu0 %v2318_v29  ;;  %868 = vst [vmem:[#allocation3 + $0x8] sm:$0xfe] %v864_v3  ;;  %870 = vst [vmem:[#allocation3 + $0x18] sm:$0x1] %v864_v3  ;;  %837 = vmatprep.mubr.f32.mxu0 %v764_v60  ;;  %v734_v18 = vld [vmem:[#allocation8 + $0x260] sm:$0xff]  ;;  %v735_v19 = vld [vmem:[#allocation8 + $0x268] sm:$0xff]  ;;  %v2364_v21 = vpack.c.bf16 %v939_v15, %v938_v14  ;;  %p2744_p4 = por %p2743_p2, %p2742_p1 }
  0xb8   : > { %2321 = vmatprep.subr.bf16.mxu0 %v2320_v35  ;;  %v922_v22 = vld [vmem:[#allocation10 + $0x160] sm:$0xff]  ;;  %v923_v23 = vld [vmem:[#allocation10 + $0x168] sm:$0xff]  ;;  %v752_v24 = vld [vmem:[#allocation8 + $0x2f0] sm:$0xff]  ;;  %v2334_v34 = vpack.c.bf16 %v735_v19, %v734_v18 }
  0xb9   : > { %2351 = vmatpush3.bf16.msra.mxu1 %v2350_v30  ;;  %v753_v25 = vld [vmem:[#allocation8 + $0x2f8] sm:$0xff]  ;;  %v940_v26 = vld [vmem:[#allocation10 + $0x1f0] sm:$0xff]  ;;  %v717_v32 = vld [vmem:[#allocation2] sm:$0xfc]  ;;  %v2366_v35 = vpack.c.bf16 %v923_v23, %v922_v22  ;;  %p2745_p9 = pnand %p2744_p4, %p2738_p12 }
  0xba   : > { %2353 = vmatprep.subr.bf16.mxu1 %v2352_v36  ;;  %v941_v27 = vld [vmem:[#allocation10 + $0x1f8] sm:$0xff]  ;;  %v736_v28 = vld [vmem:[#allocation8 + $0x270] sm:$0xff]  ;;  %v889_v36 = vld [vmem:[#allocation10 + $0x80] sm:$0xff]  ;;  %v2336_v40 = vpack.c.bf16 %v753_v25, %v752_v24 }
  0xbb   : > { %2323 = vmatpush3.bf16.msra.mxu0 %v2322_v48  ;;  %v737_v29 = vld [vmem:[#allocation8 + $0x278] sm:$0xff]  ;;  %v924_v30 = vld [vmem:[#allocation10 + $0x170] sm:$0xff]  ;;  %v2368_v41 = vpack.c.bf16 %v941_v27, %v940_v26  ;;  %v890_v46 = vld [vmem:[#allocation10 + $0x88] sm:$0xff] }
  0xbc   : > { %2325 = vmatprep.subr.bf16.mxu0 %v2324_v56  ;;  %v925_v31 = vld [vmem:[#allocation10 + $0x178] sm:$0xff]  ;;  %v1115_v47 = vld [vmem:[#allocation10 + $0x280] sm:$0xff]  ;;  %v1116_v48 = vld [vmem:[#allocation10 + $0x288] sm:$0xff]  ;;  %v2338_v54 = vpack.c.bf16 %v737_v29, %v736_v28  ;;  %v2372_v62 = vpack.c.bf16 %v890_v46, %v889_v36 }
  0xbd   : > { %2355 = vmatpush3.bf16.msra.mxu1 %v2354_v49  ;;  %v905_v44 = vld [vmem:[#allocation3] sm:$0xfe]  ;;  %v907_v45 = vld [vmem:[#allocation3 + $0x10] sm:$0x1]  ;;  %v759_v49 = vrot.slane %v717_v32, 2  ;;  %v2370_v56 = vpack.c.bf16 %v925_v31, %v924_v30  ;;  %v874_v58 = vld [vmem:[#allocation10 + $0x8] sm:$0xff]  ;;  %v2404_v63 = vpack.c.bf16 %v1116_v48, %v1115_v47 }
  0xbe   : > { %2357 = vmatprep.subr.bf16.mxu1 %v2356_v57  ;;  %v906_v37 = vld [vmem:[#allocation3 + $0x8] sm:$0xfe]  ;;  %v908_v38 = vld [vmem:[#allocation3 + $0x18] sm:$0x1]  ;;  %v873_v57 = vld [vmem:[#allocation10] sm:$0xff]  ;;  %v946_v59 = vrot.slane %v905_v44, 1 }
  0xbf   : > { %2327 = vmatpush3.bf16.msra.mxu0 %v2326_v4  ;;  %v949_v42 = vrot.slane %v906_v37, 1  ;;  %v950_v43 = vrot.slane %v908_v38, 1  ;;  %v720_v52 = vld [vmem:[#allocation2 + $0x28] sm:$0x3]  ;;  %v947_v61 = vrot.slane %v907_v45, 1  ;;  %v1099_v0 = vld [vmem:[#allocation10 + $0x200] sm:$0xff]  ;;  %v761_v4 = vsel %vm758_vm3, %v759_v49, %v760_v50 }
  0xc0   : > { %2329 = vmatprep.subr.bf16.mxu0 %v2328_v8  ;;  %v1100_v1 = vld [vmem:[#allocation10 + $0x208] sm:$0xff]  ;;  %v719_v2 = vld [vmem:[#allocation2 + $0x20] sm:$0x3]  ;;  %v767_v39 = vrot.slane %v720_v52, 2  ;;  %v891_v53 = vld [vmem:[#allocation10 + $0x90] sm:$0xff]  ;;  %v2374_v7 = vpack.c.bf16 %v874_v58, %v873_v57 }
  0xc1   : > { %2359 = vmatpush3.bf16.msra.mxu1 %v2358_v5  ;;  %v951_v51 = vsel %vm552_vm2, %v949_v42, %v950_v43  ;;  %v892_v3 = vld [vmem:[#allocation10 + $0x98] sm:$0xff]  ;;  %v1117_v5 = vld [vmem:[#allocation10 + $0x290] sm:$0xff]  ;;  %v948_v60 = vsel %vm552_vm2, %v946_v59, %v947_v61  ;;  %v2406_v8 = vpack.c.bf16 %v1100_v1, %v1099_v0  ;;  %v893_v15 = vld [vmem:[#allocation10 + $0xa0] sm:$0xff] }
  0xc2   : > { %2361 = vmatprep.subr.bf16.mxu1 %v2360_v9  ;;  %1018 = vmatprep.mubr.f32.mxu1 %v951_v51  ;;  %v1118_v6 = vld [vmem:[#allocation10 + $0x298] sm:$0xff]  ;;  %v765_v9 = vrot.slane %v719_v2, 2  ;;  %v875_v10 = vld [vmem:[#allocation10 + $0x10] sm:$0xff]  ;;  %v2376_v12 = vpack.c.bf16 %v892_v3, %v891_v53  ;;  %v894_v18 = vld [vmem:[#allocation10 + $0xa8] sm:$0xff] }
  0xc3   : > { %2331 = vmatpush3.bf16.msra.mxu0 %v2330_v16  ;;  %v876_v11 = vld [vmem:[#allocation10 + $0x18] sm:$0xff]  ;;  %v1101_v13 = vld [vmem:[#allocation10 + $0x210] sm:$0xff]  ;;  %v768_v16 = vsel %vm758_vm3, %v763_v55, %v767_v39  ;;  %v1119_v19 = vld [vmem:[#allocation10 + $0x2a0] sm:$0xff]  ;;  %v2380_v33 = vpack.c.bf16 %v894_v18, %v893_v15 }
  0xc4   : > { %2333 = vmatprep.subr.bf16.mxu0 %v2332_v20  ;;  %v1102_v14 = vld [vmem:[#allocation10 + $0x218] sm:$0xff]  ;;  %v1120_v20 = vld [vmem:[#allocation10 + $0x2a8] sm:$0xff]  ;;  %v2378_v22 = vpack.c.bf16 %v876_v11, %v875_v10  ;;  %v877_v24 = vld [vmem:[#allocation10 + $0x20] sm:$0xff] }
  0xc5   : > { %2363 = vmatpush3.bf16.msra.mxu1 %v2362_v17  ;;  %v2408_v17 = vpack.c.bf16 %v1118_v6, %v1117_v5  ;;  %v2410_v23 = vpack.c.bf16 %v1102_v14, %v1101_v13  ;;  %v878_v25 = vld [vmem:[#allocation10 + $0x28] sm:$0xff]  ;;  %v1103_v26 = vld [vmem:[#allocation10 + $0x220] sm:$0xff]  ;;  %v2412_v27 = vpack.c.bf16 %v1120_v20, %v1119_v19  ;;  %v895_v28 = vld [vmem:[#allocation10 + $0xb0] sm:$0xff] }
  0xc6   : > { %2365 = vmatprep.subr.bf16.mxu1 %v2364_v21  ;;  %v766_v21 = vsel %vm758_vm3, %v760_v50, %v765_v9  ;;  %v1104_v55 = vld [vmem:[#allocation10 + $0x228] sm:$0xff]  ;;  %v896_v29 = vld [vmem:[#allocation10 + $0xb8] sm:$0xff]  ;;  %v1121_v30 = vld [vmem:[#allocation10 + $0x2b0] sm:$0xff]  ;;  %v2382_v37 = vpack.c.bf16 %v878_v25, %v877_v24 }
  0xc7   : > { %2335 = vmatpush3.bf16.msra.mxu0 %v2334_v34  ;;  %v1122_v31 = vld [vmem:[#allocation10 + $0x2b8] sm:$0xff]  ;;  %v2414_v38 = vpack.c.bf16 %v1104_v55, %v1103_v26  ;;  %v2384_v43 = vpack.c.bf16 %v896_v29, %v895_v28  ;;  %v1105_v45 = vld [vmem:[#allocation10 + $0x230] sm:$0xff]  ;;  %v897_v47 = vld [vmem:[#allocation10 + $0xc0] sm:$0xff] }
  0xc8   : > { %2337 = vmatprep.subr.bf16.mxu0 %v2336_v40  ;;  %v1095_v32 = vld [vmem:[#allocation3 + $0x8] sm:$0xfc]  ;;  %v879_v40 = vld [vmem:[#allocation10 + $0x30] sm:$0xff]  ;;  %v2416_v44 = vpack.c.bf16 %v1122_v31, %v1121_v30  ;;  %v898_v48 = vld [vmem:[#allocation10 + $0xc8] sm:$0xff] }
  0xc9   : > { %2367 = vmatpush3.bf16.msra.mxu1 %v2366_v35  ;;  %v872_v34 = vld [vmem:[#allocation3 + $0x8] sm:$0xff]  ;;  %v1097_v35 = vld [vmem:[#allocation3 + $0x18] sm:$0x3]  ;;  %v1138_v36 = vrot.slane %v1095_v32, 2  ;;  %v1123_v49 = vld [vmem:[#allocation10 + $0x2c0] sm:$0xff]  ;;  %v2388_v58 = vpack.c.bf16 %v898_v48, %v897_v47 }
  0xca   : > { %2369 = vmatprep.subr.bf16.mxu1 %v2368_v41  ;;  %v880_v41 = vld [vmem:[#allocation10 + $0x38] sm:$0xff]  ;;  %v1139_v42 = vrot.slane %v1097_v35, 2  ;;  %v1124_v50 = vld [vmem:[#allocation10 + $0x2c8] sm:$0xff]  ;;  %v1107_v61 = vld [vmem:[#allocation10 + $0x240] sm:$0xff] }
  0xcb   : > { %2339 = vmatpush3.bf16.msra.mxu0 %v2338_v54  ;;  %v1106_v46 = vld [vmem:[#allocation10 + $0x238] sm:$0xff]  ;;  %v2386_v52 = vpack.c.bf16 %v880_v41, %v879_v40  ;;  %v882_v57 = vld [vmem:[#allocation10 + $0x48] sm:$0xff]  ;;  %v2420_v59 = vpack.c.bf16 %v1124_v50, %v1123_v49  ;;  %v1125_v1 = vld [vmem:[#allocation10 + $0x2d0] sm:$0xff] }
  0xcc   : > { %2373 = vmatprep.subr.bf16.mxu0 %v2372_v62  ;;  %v1140_v51 = vsel %vm758_vm3, %v1138_v36, %v1139_v42  ;;  %v2418_v54 = vpack.c.bf16 %v1106_v46, %v1105_v45  ;;  %v1108_v62 = vld [vmem:[#allocation10 + $0x248] sm:$0xff]  ;;  %v900_v0 = vld [vmem:[#allocation10 + $0xd8] sm:$0xff]  ;;  %v883_v3 = vld [vmem:[#allocation10 + $0x50] sm:$0xff] }
  0xcd   : > { %2371 = vmatpush3.bf16.msra.mxu1 %v2370_v56  ;;  %v881_v56 = vld [vmem:[#allocation10 + $0x40] sm:$0xff]  ;;  %v1126_v2 = vld [vmem:[#allocation10 + $0x2d8] sm:$0xff]  ;;  %v2422_v53 = vpack.c.bf16 %v1108_v62, %v1107_v61  ;;  %v902_v9 = vld [vmem:[#allocation10 + $0xe8] sm:$0xff] }
  0xce   : > { %2405 = vmatprep.subr.bf16.mxu1 %v2404_v63  ;;  %838 = vmatmul.mubr.f32.vlgmr.msra.gmra.mrb[4].mxu0 %v761_v4  ;;  %v899_v63 = vld [vmem:[#allocation10 + $0xd0] sm:$0xff]  ;;  %v2390_v39 = vpack.c.bf16 %v882_v57, %v881_v56  ;;  %v884_v4 = vld [vmem:[#allocation10 + $0x58] sm:$0xff]  ;;  %v2424_v6 = vpack.c.bf16 %v1126_v2, %v1125_v1  ;;  %v1127_v10 = vld [vmem:[#allocation10 + $0x2e0] sm:$0xff] }
  0xcf   : > { %2375 = vmatpush3.bf16.msra.mxu0 %v2374_v7  ;;  %842 = vmatprep.mubr.f32.mxu0 %v768_v16  ;;  %v2392_v5 = vpack.c.bf16 %v900_v0, %v899_v63  ;;  %v1109_v7 = vld [vmem:[#allocation10 + $0x250] sm:$0xff]  ;;  %v1128_v11 = vld [vmem:[#allocation10 + $0x2e8] sm:$0xff]  ;;  %v885_v14 = vld [vmem:[#allocation10 + $0x60] sm:$0xff] }
  0xd0   : > { %1019 = vmatmul.mubr.f32.vlgmr.msra.gmra.mrb[4].mxu1 %v948_v60  ;;  %2377 = vmatprep.subr.bf16.mxu0 %v2376_v12  ;;  %v1110_v60 = vld [vmem:[#allocation10 + $0x258] sm:$0xff]  ;;  %v2394_v12 = vpack.c.bf16 %v884_v4, %v883_v3  ;;  %v886_v15 = vld [vmem:[#allocation10 + $0x68] sm:$0xff]  ;;  %v1111_v18 = vld [vmem:[#allocation10 + $0x260] sm:$0xff] }
  0xd1   : > { %2407 = vmatpush3.bf16.msra.mxu1 %v2406_v8  ;;  %1207 = vmatprep.mubr.f32.mxu1 %v1140_v51  ;;  %v901_v8 = vld [vmem:[#allocation10 + $0xe0] sm:$0xff]  ;;  %v2426_v13 = vpack.c.bf16 %v1110_v60, %v1109_v7  ;;  %v1112_v19 = vld [vmem:[#allocation10 + $0x268] sm:$0xff]  ;;  %v903_v20 = vld [vmem:[#allocation10 + $0xf0] sm:$0xff]  ;;  %v2398_v24 = vpack.c.bf16 %v886_v15, %v885_v14 }
  0xd2   : > { %2409 = vmatprep.subr.bf16.mxu1 %v2408_v17  ;;  %843 = vmatmul.mubr.f32.gmra.mrb[6].mxu0 %v766_v21  ;;  %v2396_v16 = vpack.c.bf16 %v902_v9, %v901_v8  ;;  %v2428_v17 = vpack.c.bf16 %v1128_v11, %v1127_v10  ;;  %v904_v21 = vld [vmem:[#allocation10 + $0xf8] sm:$0xff]  ;;  %v2430_v25 = vpack.c.bf16 %v1112_v19, %v1111_v18  ;;  %v887_v26 = vld [vmem:[#allocation10 + $0x70] sm:$0xff]  ;;  %v1096_v31 = vld [vmem:[#allocation3 + $0x10] sm:$0x3] }
  0xd3   : > { %2379 = vmatpush3.bf16.msra.mxu0 %v2378_v22  ;;  %1088 = vmatprep.mubr.f32.mxu0 %v872_v34  ;;  %v1129_v22 = vld [vmem:[#allocation10 + $0x2f0] sm:$0xff]  ;;  %v2400_v55 = vpack.c.bf16 %v904_v21, %v903_v20  ;;  %v1114_v29 = vld [vmem:[#allocation10 + $0x278] sm:$0xff]  ;;  %v1136_v36 = vrot.slane %v1096_v31, 2  ;;  %v1367_v40 = vld [vmem:[#allocation11 + $0x180] sm:$0xff] }
  0xd4   : > { %2381 = vmatprep.subr.bf16.mxu0 %v2380_v33  ;;  %v888_v33 = vld [vmem:[#allocation10 + $0x78] sm:$0xff]  ;;  %v1094_v30 = vld [vmem:[#allocation3] sm:$0xfc]  ;;  %v1368_v41 = vld [vmem:[#allocation11 + $0x188] sm:$0xff] }
  0xd5   : > { %2411 = vmatpush3.bf16.msra.mxu1 %v2410_v23  ;;  %v1130_v23 = vld [vmem:[#allocation10 + $0x2f8] sm:$0xff]  ;;  %v2402_v32 = vpack.c.bf16 %v888_v33, %v887_v26  ;;  %v1135_v35 = vrot.slane %v1094_v30, 2  ;;  %v1351_v42 = vld [vmem:[#allocation11 + $0x100] sm:$0xff]  ;;  %v1369_v45 = vld [vmem:[#allocation11 + $0x190] sm:$0xff] }
  0xd6   : > { %2413 = vmatprep.subr.bf16.mxu1 %v2412_v27  ;;  %v1113_v27 = vld [vmem:[#allocation10 + $0x270] sm:$0xff]  ;;  %v2432_v28 = vpack.c.bf16 %v1130_v23, %v1129_v22  ;;  %v1370_v46 = vld [vmem:[#allocation11 + $0x198] sm:$0xff]  ;;  %v1371_v51 = vld [vmem:[#allocation11 + $0x1a0] sm:$0xff] }
  0xd7   : > { %2383 = vmatpush3.bf16.msra.mxu0 %v2382_v37  ;;  %v2434_v34 = vpack.c.bf16 %v1114_v29, %v1113_v27  ;;  %v871_v37 = vld [vmem:[#allocation3] sm:$0xff]  ;;  %v2440_v48 = vpack.c.bf16 %v1370_v46, %v1369_v45  ;;  %v1354_v50 = vld [vmem:[#allocation11 + $0x118] sm:$0xff]  ;;  %v1355_v57 = vld [vmem:[#allocation11 + $0x120] sm:$0xff] }
  0xd8   : > { %2385 = vmatprep.subr.bf16.mxu0 %v2384_v43  ;;  %v2436_v43 = vpack.c.bf16 %v1368_v41, %v1367_v40  ;;  %v1353_v49 = vld [vmem:[#allocation11 + $0x110] sm:$0xff]  ;;  %v1374_v61 = vld [vmem:[#allocation11 + $0x1b8] sm:$0xff]  ;;  %v1375_v2 = vld [vmem:[#allocation11 + $0x1c0] sm:$0xff] }
  0xd9   : > { %2415 = vmatpush3.bf16.msra.mxu1 %v2414_v38  ;;  %v1137_v38 = vsel %vm758_vm3, %v1135_v35, %v1136_v36  ;;  %v1357_v0 = vld [vmem:[#allocation11 + $0x130] sm:$0xff]  ;;  %v1358_v1 = vld [vmem:[#allocation11 + $0x138] sm:$0xff]  ;;  %v1359_v4 = vld [vmem:[#allocation11 + $0x140] sm:$0xff] }
  0xda   : > { %2417 = vmatprep.subr.bf16.mxu1 %v2416_v44  ;;  %v1352_v44 = vld [vmem:[#allocation11 + $0x108] sm:$0xff]  ;;  %v1378_v7 = vld [vmem:[#allocation11 + $0x1d8] sm:$0xff]  ;;  %v1305_v9 = vld [vmem:[%s434_s20] sm:$0xff] }
  0xdb   : > { %2387 = vmatpush3.bf16.msra.mxu0 %v2386_v52  ;;  %v2438_v47 = vpack.c.bf16 %v1352_v44, %v1351_v42  ;;  %v1372_v52 = vld [vmem:[#allocation11 + $0x1a8] sm:$0xff]  ;;  %v1361_v10 = vld [vmem:[#allocation11 + $0x150] sm:$0xff]  ;;  %v1362_v11 = vld [vmem:[#allocation11 + $0x158] sm:$0xff] }
  0xdc   : > { %2389 = vmatprep.subr.bf16.mxu0 %v2388_v58  ;;  %v2444_v56 = vpack.c.bf16 %v1372_v52, %v1371_v51  ;;  %v1356_v58 = vld [vmem:[#allocation11 + $0x128] sm:$0xff]  ;;  %v1379_v15 = vld [vmem:[#allocation11 + $0x1e0] sm:$0xff]  ;;  %v1381_v22 = vld [vmem:[#allocation11 + $0x1f0] sm:$0xff] }
  0xdd   : > { %2419 = vmatpush3.bf16.msra.mxu1 %v2418_v54  ;;  %v2442_v54 = vpack.c.bf16 %v1354_v50, %v1353_v49  ;;  %v2446_v62 = vpack.c.bf16 %v1356_v58, %v1355_v57  ;;  %v1363_v19 = vld [vmem:[#allocation11 + $0x160] sm:$0xff]  ;;  %v1364_v20 = vld [vmem:[#allocation11 + $0x168] sm:$0xff]  ;;  %v1382_v23 = vld [vmem:[#allocation11 + $0x1f8] sm:$0xff] }
  0xde   : > { %2421 = vmatprep.subr.bf16.mxu1 %v2420_v59  ;;  %v1373_v59 = vld [vmem:[#allocation11 + $0x1b0] sm:$0xff]  ;;  %v2462_v21 = vpack.c.bf16 %v1364_v20, %v1363_v19  ;;  %v1366_v26 = vld [vmem:[#allocation11 + $0x178] sm:$0xff]  ;;  %v1548_v29 = vld [vmem:[#allocation11 + $0x280] sm:$0xff] }
  0xdf   : > { %2391 = vmatpush3.bf16.msra.mxu0 %v2390_v39  ;;  %v2448_v63 = vpack.c.bf16 %v1374_v61, %v1373_v59  ;;  %v1376_v39 = vld [vmem:[#allocation11 + $0x1c8] sm:$0xff]  ;;  %v1551_v40 = vld [vmem:[#allocation11 + $0x298] sm:$0xff]  ;;  %v1534_v41 = vld [vmem:[#allocation11 + $0x210] sm:$0xff] }
  0xe0   : > { %2393 = vmatprep.subr.bf16.mxu0 %v2392_v5  ;;  %v2452_v3 = vpack.c.bf16 %v1376_v39, %v1375_v2  ;;  %v1360_v5 = vld [vmem:[#allocation11 + $0x148] sm:$0xff]  ;;  %v1535_v42 = vld [vmem:[#allocation11 + $0x218] sm:$0xff]  ;;  %v1552_v45 = vld [vmem:[#allocation11 + $0x2a0] sm:$0xff] }
  0xe1   : > { %2423 = vmatpush3.bf16.msra.mxu1 %v2422_v53  ;;  %v2450_v53 = vpack.c.bf16 %v1358_v1, %v1357_v0  ;;  %v2454_v60 = vpack.c.bf16 %v1360_v5, %v1359_v4  ;;  %v1549_v30 = vld [vmem:[#allocation11 + $0x288] sm:$0xff]  ;;  %v2506_v44 = vpack.c.bf16 %v1535_v42, %v1534_v41  ;;  %v1554_v51 = vld [vmem:[#allocation11 + $0x2b0] sm:$0xff]  ;;  %v1555_v52 = vld [vmem:[#allocation11 + $0x2b8] sm:$0xff] }
  0xe2   : > { %2425 = vmatprep.subr.bf16.mxu1 %v2424_v6  ;;  %v1377_v6 = vld [vmem:[#allocation11 + $0x1d0] sm:$0xff]  ;;  %v2500_v31 = vpack.c.bf16 %v1549_v30, %v1548_v29  ;;  %v1533_v36 = vld [vmem:[#allocation11 + $0x208] sm:$0xff]  ;;  %v2512_v57 = vpack.c.bf16 %v1555_v52, %v1554_v51  ;;  %v1556_v59 = vld [vmem:[#allocation11 + $0x2c0] sm:$0xff] }
  0xe3   : > { %2395 = vmatpush3.bf16.msra.mxu0 %v2394_v12  ;;  %v2456_v8 = vpack.c.bf16 %v1378_v7, %v1377_v6  ;;  %v1307_v12 = vcombine.high %v1305_v9, %v1305_v9  ;;  %v1553_v46 = vld [vmem:[#allocation11 + $0x2a8] sm:$0xff]  ;;  %v1558_v2 = vld [vmem:[#allocation11 + $0x2d0] sm:$0xff]  ;;  %v1559_v39 = vld [vmem:[#allocation11 + $0x2d8] sm:$0xff] }
  0xe4   : > { %2397 = vmatprep.subr.bf16.mxu0 %v2396_v16  ;;  %v1380_v16 = vld [vmem:[#allocation11 + $0x1e8] sm:$0xff]  ;;  %v2508_v49 = vpack.c.bf16 %v1553_v46, %v1552_v45  ;;  %v2520_v4 = vpack.c.bf16 %v1559_v39, %v1558_v2  ;;  %v1560_v6 = vld [vmem:[#allocation11 + $0x2e0] sm:$0xff]  ;;  %v1318_v39 = vld [vmem:[#allocation11 + $0x10] sm:$0xff] }
  0xe5   : > { %2427 = vmatpush3.bf16.msra.mxu1 %v2426_v13  ;;  %v2458_v13 = vpack.c.bf16 %v1362_v11, %v1361_v10  ;;  %v1309_v14 = vrot.slane %v1307_v12, 7  ;;  %v2460_v18 = vpack.c.bf16 %v1380_v16, %v1379_v15  ;;  %v1557_v61 = vld [vmem:[#allocation11 + $0x2c8] sm:$0xff]  ;;  %v1562_v11 = vld [vmem:[#allocation11 + $0x2f0] sm:$0xff]  ;;  %v1563_v12 = vld [vmem:[#allocation11 + $0x2f8] sm:$0xff] }
  0xe6   : > { %2429 = vmatprep.subr.bf16.mxu1 %v2428_v17  ;;  %v1308_v17 = vrot.slane %v1305_v9, 7  ;;  %v2516_v0 = vpack.c.bf16 %v1557_v61, %v1556_v59  ;;  %v1561_v7 = vld [vmem:[#allocation11 + $0x2e8] sm:$0xff]  ;;  %v2528_v15 = vpack.c.bf16 %v1563_v12, %v1562_v11  ;;  %v1332_v52 = vld [vmem:[#allocation11 + $0x80] sm:$0xff]  ;;  %v1334_v59 = vld [vmem:[#allocation11 + $0x90] sm:$0xff] }
  0xe7   : > { %2399 = vmatpush3.bf16.msra.mxu0 %v2398_v24  ;;  %1313 = vst [vmem:[#allocation4 + $0x8] sm:$0x1e] %v1309_v14  ;;  %v2464_v24 = vpack.c.bf16 %v1382_v23, %v1381_v22  ;;  %v2524_v9 = vpack.c.bf16 %v1561_v7, %v1560_v6  ;;  %v1547_v14 = vld [vmem:[#allocation11 + $0x278] sm:$0xff] }
  0xe8   : > { %2401 = vmatprep.subr.bf16.mxu0 %v2400_v55  ;;  %1312 = vst [vmem:[#allocation4] sm:$0x1e] %v1308_v17  ;;  %v852_v55 = vld [vmem:[%s3230_s6] sm:$0xff]  ;;  %v1335_v61 = vld [vmem:[#allocation11 + $0x98] sm:$0xff] }
  0xe9   : > { %2431 = vmatpush3.bf16.msra.mxu1 %v2430_v25  ;;  %v1365_v25 = vld [vmem:[#allocation11 + $0x170] sm:$0xff]  ;;  %v2472_v2 = vpack.c.bf16 %v1335_v61, %v1334_v59  ;;  %v435_v59 = vld [vmem:[%s3232_s8] sm:$0xff] }
  0xea   : > { %2433 = vmatprep.subr.bf16.mxu1 %v2432_v28  ;;  %v2466_v33 = vpack.c.bf16 %v1366_v26, %v1365_v25 }
  0xeb   : > { %2403 = vmatpush3.bf16.msra.mxu0 %v2402_v32 }
  0xed   : > { %2435 = vmatpush3.bf16.msra.mxu1 %v2434_v34  ;;  %v1532_v34 = vld [vmem:[#allocation11 + $0x200] sm:$0xff] }
  0xee   : > { %1089 = vmatmul.mubr.f32.vlgmr.msra.gmra.mrb[8].mxu0 %v871_v37  ;;  %2437 = vmatprep.subr.bf16.mxu1 %v2436_v43  ;;  %v1349_v27 = vld [vmem:[#allocation4 + $0x8] sm:$0x1e]  ;;  %v2502_v37 = vpack.c.bf16 %v1533_v36, %v1532_v34 }
  0xef   : > { %v1386_v28 = vrot.slane %v1349_v27, 1  ;;  %2236 = vmatprep.mubr.msk.f32.mxu0 %vm1214_vm4, %v852_v55  ;;  %v1348_v32 = vld [vmem:[#allocation4] sm:$0x1e]  ;;  %v1530_v17 = vld [vmem:[#allocation4 + $0x8] sm:$0x3c] }
  0xf0   : > { %1208 = vmatmul.mubr.f32.vlgmr.msra.gmra.mrb[6].mxu1 %v1137_v38  ;;  %v1385_v35 = vrot.slane %v1348_v32, 1  ;;  %v1550_v38 = vld [vmem:[#allocation11 + $0x290] sm:$0xff] }
  0xf1   : > { %2439 = vmatpush3.bf16.msra.mxu1 %v2438_v47  ;;  %1453 = vmatprep.mubr.f32.mxu1 %v1386_v28  ;;  %v2504_v43 = vpack.c.bf16 %v1551_v40, %v1550_v38  ;;  %v1536_v47 = vld [vmem:[#allocation11 + $0x220] sm:$0xff]  ;;  %v1529_v19 = vld [vmem:[#allocation4] sm:$0x3c] }
  0xf2   : > { %2441 = vmatprep.subr.bf16.mxu1 %v2440_v48  ;;  %v1537_v48 = vld [vmem:[#allocation11 + $0x228] sm:$0xff]  ;;  %v1566_v20 = vrot.slane %v1529_v19, 2  ;;  %v1324_v19 = vld [vmem:[#allocation11 + $0x40] sm:$0xff] }
  0xf3   : > { %v2510_v50 = vpack.c.bf16 %v1537_v48, %v1536_v47 }
  0xf5   : > { %2443 = vmatpush3.bf16.msra.mxu1 %v2442_v54  ;;  %v1538_v54 = vld [vmem:[#allocation11 + $0x230] sm:$0xff] }
  0xf6   : > { %2445 = vmatprep.subr.bf16.mxu1 %v2444_v56  ;;  %v1539_v56 = vld [vmem:[#allocation11 + $0x238] sm:$0xff] }
  0xf7   : > { %v2514_v58 = vpack.c.bf16 %v1539_v56, %v1538_v54  ;;  %v1333_v54 = vld [vmem:[#allocation11 + $0x88] sm:$0xff] }
  0xf9   : > { %2447 = vmatpush3.bf16.msra.mxu1 %v2446_v62  ;;  %v1540_v62 = vld [vmem:[#allocation11 + $0x240] sm:$0xff] }
  0xfa   : > { %2449 = vmatprep.subr.bf16.mxu1 %v2448_v63  ;;  %v1541_v63 = vld [vmem:[#allocation11 + $0x248] sm:$0xff] }
  0xfb   : > { %v2518_v1 = vpack.c.bf16 %v1541_v63, %v1540_v62  ;;  %v2468_v63 = vpack.c.bf16 %v1333_v54, %v1332_v52 }
  0xfd   : > { %2451 = vmatpush3.bf16.msra.mxu1 %v2450_v53  ;;  %v1542_v53 = vld [vmem:[#allocation11 + $0x250] sm:$0xff] }
  0xfe   : > { %2453 = vmatprep.subr.bf16.mxu1 %v2452_v3  ;;  %v1543_v3 = vld [vmem:[#allocation11 + $0x258] sm:$0xff] }
  0xff   : > { %v2522_v5 = vpack.c.bf16 %v1543_v3, %v1542_v53  ;;  %v1319_v53 = vld [vmem:[#allocation11 + $0x18] sm:$0xff] }
 0x100   : > { %v1315_v3 = vld [vmem:[#allocation4 + $0x8] sm:$0xf]  ;;  %v2474_v6 = vpack.c.bf16 %v1319_v53, %v1318_v39 }
 0x101   : > { %2455 = vmatpush3.bf16.msra.mxu1 %v2454_v60  ;;  %v1544_v60 = vld [vmem:[#allocation11 + $0x260] sm:$0xff] }
 0x102   : > { %2457 = vmatprep.subr.bf16.mxu1 %v2456_v8  ;;  %v1545_v8 = vld [vmem:[#allocation11 + $0x268] sm:$0xff] }
 0x103   : > { %v2526_v10 = vpack.c.bf16 %v1545_v8, %v1544_v60  ;;  %v1320_v60 = vld [vmem:[#allocation11 + $0x20] sm:$0xff]  ;;  %v1321_v8 = vld [vmem:[#allocation11 + $0x28] sm:$0xff] }
 0x104   : > { %v2478_v11 = vpack.c.bf16 %v1321_v8, %v1320_v60 }
 0x105   : > { %2459 = vmatpush3.bf16.msra.mxu1 %v2458_v13  ;;  %v1546_v13 = vld [vmem:[#allocation11 + $0x270] sm:$0xff] }
 0x106   : > { %2461 = vmatprep.subr.bf16.mxu1 %v2460_v18  ;;  %v2530_v16 = vpack.c.bf16 %v1547_v14, %v1546_v13  ;;  %v1567_v18 = vrot.slane %v1530_v17, 2  ;;  %v1322_v13 = vld [vmem:[#allocation11 + $0x30] sm:$0xff]  ;;  %v1323_v14 = vld [vmem:[#allocation11 + $0x38] sm:$0xff] }
 0x107   : > { %v2482_v17 = vpack.c.bf16 %v1323_v14, %v1322_v13 }
 0x109   : > { %2463 = vmatpush3.bf16.msra.mxu1 %v2462_v21 }
 0x10a   : > { %2465 = vmatprep.subr.bf16.mxu1 %v2464_v24 }
 0x10d   : > { %2467 = vmatpush3.bf16.msra.mxu1 %v2466_v33 }
 0x10e   : > { %2501 = vmatprep.subr.bf16.mxu1 %v2500_v31 }
 0x110   : > { %1454 = vmatmul.mubr.f32.vlgmr.msra.gmra.mrb[8].mxu1 %v1385_v35 }
 0x111   : > { %2503 = vmatpush3.bf16.msra.mxu1 %v2502_v37  ;;  %1634 = vmatprep.mubr.f32.mxu1 %v1567_v18 }
 0x112   : > { %2505 = vmatprep.subr.bf16.mxu1 %v2504_v43 }
 0x115   : > { %2507 = vmatpush3.bf16.msra.mxu1 %v2506_v44 }
 0x116   : > { %2509 = vmatprep.subr.bf16.mxu1 %v2508_v49 }
 0x119   : > { %2511 = vmatpush3.bf16.msra.mxu1 %v2510_v50 }
 0x11a   : > { %2513 = vmatprep.subr.bf16.mxu1 %v2512_v57  ;;  %v1316_v57 = vld [vmem:[#allocation11] sm:$0xff] }
 0x11d   : > { %2515 = vmatpush3.bf16.msra.mxu1 %v2514_v58  ;;  %v1317_v58 = vld [vmem:[#allocation11 + $0x8] sm:$0xff] }
 0x11e   : > { %2517 = vmatprep.subr.bf16.mxu1 %v2516_v0  ;;  %v853_v0 = vld [vmem:[%s3230_s6 + $0x8] sm:$0xff] }
 0x121   : > { %2519 = vmatpush3.bf16.msra.mxu1 %v2518_v1  ;;  %v2470_v1 = vpack.c.bf16 %v1317_v58, %v1316_v57  ;;  %v1299_v57 = vld [vmem:[%s3231_s7 + $0x8] sm:$0xff] }
 0x122   : > { %2521 = vmatprep.subr.bf16.mxu1 %v2520_v4  ;;  %v1336_v4 = vld [vmem:[#allocation11 + $0xa0] sm:$0xff]  ;;  %v436_v58 = vld [vmem:[%s3232_s8 + $0x8] sm:$0xff] }
 0x125   : > { %2523 = vmatpush3.bf16.msra.mxu1 %v2522_v5  ;;  %v1337_v5 = vld [vmem:[#allocation11 + $0xa8] sm:$0xff] }
 0x126   : > { %2525 = vmatprep.subr.bf16.mxu1 %v2524_v9  ;;  %v2476_v7 = vpack.c.bf16 %v1337_v5, %v1336_v4  ;;  %v1338_v9 = vld [vmem:[#allocation11 + $0xb0] sm:$0xff] }
 0x129   : > { %2527 = vmatpush3.bf16.msra.mxu1 %v2526_v10  ;;  %v1339_v10 = vld [vmem:[#allocation11 + $0xb8] sm:$0xff] }
 0x12a   : > { %2529 = vmatprep.subr.bf16.mxu1 %v2528_v15  ;;  %v2480_v12 = vpack.c.bf16 %v1339_v10, %v1338_v9  ;;  %v1340_v15 = vld [vmem:[#allocation11 + $0xc0] sm:$0xff] }
 0x12d   : > { %2531 = vmatpush3.bf16.msra.mxu1 %v2530_v16  ;;  %v1341_v16 = vld [vmem:[#allocation11 + $0xc8] sm:$0xff] }
 0x12e   : > { %v2484_v18 = vpack.c.bf16 %v1341_v16, %v1340_v15 }
 0x130   : > { %1635 = vmatmul.mubr.f32.vlgmr.msra.gmra.mrb[10].mxu1 %v1566_v20  ;;  %v1325_v20 = vld [vmem:[#allocation11 + $0x48] sm:$0xff] }
 0x181   : > { %v1936_v21 = vpop.f32.mrb[0].mxu0 }
 0x182   : > { %v1937_v23 = vpop.f32.mrb[1].mxu0 }
 0x183   : > { %v1974_v22 = vpop.f32.mrb[0].mxu1  ;;  %v1938_v25 = vadd.f32 %v1937_v23, %v1936_v21  ;;  %v1342_v21 = vld [vmem:[#allocation11 + $0xd0] sm:$0xff]  ;;  %v2486_v23 = vpack.c.bf16 %v1325_v20, %v1324_v19 }
 0x184   : > { %v1975_v24 = vpop.f32.mrb[1].mxu1 }
 0x185   : > { %v1976_v26 = vadd.f32 %v1975_v24, %v1974_v22  ;;  %v1343_v22 = vld [vmem:[#allocation11 + $0xd8] sm:$0xff] }
 0x186   : > { %v2488_v24 = vpack.c.bf16 %v1343_v22, %v1342_v21 }
 0x187   : > { %v709_v33 = vadd.f32 %v1976_v26, %v1938_v25  ;;  %v1977_v27 = vpop.f32.mrb[2].mxu1  ;;  %v1326_v25 = vld [vmem:[#allocation11 + $0x50] sm:$0xff]  ;;  %v1327_v26 = vld [vmem:[#allocation11 + $0x58] sm:$0xff] }
 0x188   : > { %v1978_v55 = vpop.f32.mrb[3].mxu1  ;;  %v1939_v29 = vpop.f32.mrb[2].mxu0 }
 0x189   : > { %v1979_v28 = vadd.f32 %v1978_v55, %v1977_v27  ;;  %v1940_v30 = vpop.f32.mrb[3].mxu0  ;;  %v1345_v27 = vld [vmem:[#allocation11 + $0xe8] sm:$0xff]  ;;  %v2490_v55 = vpack.c.bf16 %v1327_v26, %v1326_v25 }
 0x18a   : > { %v1941_v31 = vadd.f32 %v1940_v30, %v1939_v29  ;;  %v1328_v29 = vld [vmem:[#allocation11 + $0x60] sm:$0xff]  ;;  %v1329_v30 = vld [vmem:[#allocation11 + $0x68] sm:$0xff] }
 0x18c   : > { %v714_v32 = vadd.f32 %v1979_v28, %v1941_v31  ;;  %v1346_v31 = vld [vmem:[#allocation11 + $0xf0] sm:$0xff] }
 0x1a1   : > { %v2012_v34 = vpop.f32.mrb[4].mxu0 }
 0x1a2   : > { %v2013_v36 = vpop.f32.mrb[5].mxu0 }
 0x1a3   : > { %v2050_v35 = vpop.f32.mrb[4].mxu1  ;;  %v2014_v38 = vadd.f32 %v2013_v36, %v2012_v34  ;;  %v2494_v34 = vpack.c.bf16 %v1329_v30, %v1328_v29  ;;  %v1330_v36 = vld [vmem:[#allocation11 + $0x70] sm:$0xff] }
 0x1a4   : > { %v2051_v37 = vpop.f32.mrb[5].mxu1 }
 0x1a5   : > { %v2052_v40 = vadd.f32 %v2051_v37, %v2050_v35  ;;  %v3151_v41 = vadd.f32 %v2014_v38, %v709_v33  ;;  %v2015_v42 = vpop.f32.mrb[6].mxu0  ;;  %v1344_v33 = vld [vmem:[#allocation11 + $0xe0] sm:$0xff]  ;;  %v1331_v37 = vld [vmem:[#allocation11 + $0x78] sm:$0xff] }
 0x1a6   : > { %v2016_v43 = vpop.f32.mrb[7].mxu0  ;;  %v2492_v28 = vpack.c.bf16 %v1345_v27, %v1344_v33  ;;  %v2498_v38 = vpack.c.bf16 %v1331_v37, %v1330_v36 }
 0x1a7   : > { %v2017_v44 = vadd.f32 %v2016_v43, %v2015_v42 }
 0x1a9   : > { %v3153_v45 = vadd.f32 %v2017_v44, %v714_v32  ;;  %v1347_v32 = vld [vmem:[#allocation11 + $0xf8] sm:$0xff] }
 0x1aa   : > { %v2496_v35 = vpack.c.bf16 %v1347_v32, %v1346_v31 }
 0x1ab   : > { %v851_v61 = vadd.f32 %v3153_v45, %v436_v58 }
 0x1c1   : > { %v2085_v46 = vpop.f32.mrb[8].mxu0 }
 0x1c2   : > { %v2086_v48 = vpop.f32.mrb[9].mxu0 }
 0x1c3   : > { %v2120_v47 = vpop.f32.mrb[6].mxu1  ;;  %v2087_v50 = vadd.f32 %v2086_v48, %v2085_v46 }
 0x1c4   : > { %v2121_v49 = vpop.f32.mrb[7].mxu1 }
 0x1c5   : > { %v2122_v51 = vadd.f32 %v2121_v49, %v2120_v47  ;;  %v1091_v56 = vadd.f32 %v2087_v50, %v2052_v40  ;;  %v1314_v40 = vld [vmem:[#allocation4] sm:$0xf]  ;;  %v1298_v49 = vld [vmem:[%s3231_s7] sm:$0xff] }
 0x1c7   : > { %v1213_v62 = vadd.f32 %v2122_v51, %v1091_v56 }
 0x1c9   : > { %2234 = vmatprep.subr.mxu0 %v1213_v62 }
 0x1ca   : > { %2235 = vmatpush3.msra.mxu0 %v1213_v62 }
 0x1cb   : > { %2469 = vmatprep.subr.bf16.mxu0 %v2468_v63  ;;  %2237 = vmatmul.mubr.msk.f32.vlgmr.msra.gmra.mrb[10].mxu0 %vm1214_vm4, %v853_v0  ;;  %v850_v63 = vadd.f32 %v3151_v41, %v435_v59 }
 0x1cc   : > { %2471 = vmatpush3.bf16.msra.mxu0 %v2470_v1  ;;  %1523 = vmatprep.mubr.f32.mxu0 %v1315_v3 }
 0x1cd   : > { %2473 = vmatprep.subr.bf16.mxu0 %v2472_v2 }
 0x1d0   : > { %2475 = vmatpush3.bf16.msra.mxu0 %v2474_v6 }
 0x1d1   : > { %2477 = vmatprep.subr.bf16.mxu0 %v2476_v7 }
 0x1d4   : > { %2479 = vmatpush3.bf16.msra.mxu0 %v2478_v11 }
 0x1d5   : > { %2481 = vmatprep.subr.bf16.mxu0 %v2480_v12 }
 0x1d8   : > { %2483 = vmatpush3.bf16.msra.mxu0 %v2482_v17 }
 0x1d9   : > { %2485 = vmatprep.subr.bf16.mxu0 %v2484_v18 }
 0x1dc   : > { %2487 = vmatpush3.bf16.msra.mxu0 %v2486_v23 }
 0x1dd   : > { %2489 = vmatprep.subr.bf16.mxu0 %v2488_v24 }
 0x1e0   : > { %2491 = vmatpush3.bf16.msra.mxu0 %v2490_v55 }
 0x1e1   : > { %2493 = vmatprep.subr.bf16.mxu0 %v2492_v28 }
 0x1e3   : > { %v2158_v42 = vpop.f32.mrb[8].mxu1 }
 0x1e4   : > { %2495 = vmatpush3.bf16.msra.mxu0 %v2494_v34  ;;  %v2159_v43 = vpop.f32.mrb[9].mxu1 }
 0x1e5   : > { %2497 = vmatprep.subr.bf16.mxu0 %v2496_v35  ;;  %v2160_v44 = vadd.f32 %v2159_v43, %v2158_v42 }
 0x1e8   : > { %2499 = vmatpush3.bf16.msra.mxu0 %v2498_v38 }
 0x1eb   : > { %1524 = vmatmul.mubr.f32.vlgmr.msra.gmra.mrb[12].mxu0 %v1314_v40 }
 0x1ec   : > { %2241 = vmatprep.mubr.msk.f32.mxu0 %vm1641_vm5, %v1298_v49 }
 0x203   : > { %v2228_v46 = vpop.f32.mrb[10].mxu1 }
 0x204   : > { %v2229_v47 = vpop.f32.mrb[11].mxu1 }
 0x205   : > { %v2230_v48 = vadd.f32 %v2229_v47, %v2228_v46 }
 0x2be   : > { %v2193_v50 = vpop.f32.mrb[12].mxu0 }
 0x2bf   : > { %v2194_v51 = vpop.f32.mrb[13].mxu0 }
 0x2c0   : > { %v2195_v52 = vadd.f32 %v2194_v51, %v2193_v50 }
 0x2c2   : > { %v1526_v54 = vadd.f32 %v2195_v52, %v2160_v44 }
 0x2c4   : > { %v1640_v56 = vadd.f32 %v2230_v48, %v1526_v54 }
 0x2c6   : > { %2239 = vmatprep.subr.msk.mxu0 %vm1648_vm6, %v1640_v56 }
 0x2c7   : > { %2240 = vmatpush3.msk.msra.mxu0 %vm1648_vm6, %v1640_v56 }
 0x2c8   : > { %2242 = vmatmul.mubr.msk.f32.vlgmr.msra.gmra.mrb[10].mxu0 %vm1641_vm5, %v1299_v57 }
 0x39b   : > { %v2243_v62 = vpop.f32.mrb[10].mxu0 }
 0x39c   : > { %v2532_v0 = vadd.f32 %v2243_v62, %v851_v61  ;;  %v1718_v1 = vpop.f32.mrb[11].mxu0 }
 0x39d   : > { %v2533_v2 = vadd.f32 %v1718_v1, %v850_v63 }
 0x39e   : > { %1730 = vst [vmem:[%s424_s26 + $0x8] sm:$0xff] %v2532_v0 }
 0x39f   : > { %1729 = vst [vmem:[%s424_s26] sm:$0xff] %v2533_v2 }
 0x3a0   : > { %2748 = shalt.err (!%p2745_p9)
}
 0x3a1   : > { %s2749_s22 = scalar_lea.hbm %s3180_s15, 256  ;;  %s2753_s9 = scalar_lea.hbm %s3257_s28, 512 }
 0x3a2   : > { %p2750_p0 = scmp.ne.s32.totalorder %s3180_s15, %s2749_s22  ;;  %p2754_p13 = scmp.lt.u32.totalorder %s3180_s15, %s3257_s28 }
 0x3a3   : > { %p2755_p6 = scmp.lt.u32.totalorder %s2753_s9, %s2749_s22  ;;  %p2757_p3 = scmp.lt.u32.totalorder %s2749_s22, %s3180_s15 }
 0x3a4   : > { %p2751_p11 = pnand %p2750_p0, %p3027_p5 }
 0x3a5   : > { %p2756_p10 = por %p2755_p6, %p2754_p13 }
 0x3a6   : > { %p2752_p8 = pneg %p2751_p11 }
 0x3a7   : > { %p2758_p7 = por %p2757_p3, %p2756_p10 }
 0x3a9   : > { %p2759_p12 = pnand %p2758_p7, %p2752_p8 }
 0x3ab   : > { %2762 = shalt.err (!%p2759_p12)
}
 0x3ac   : > { %s2821_s25 = smov 128   ;;  %s2822_s17 = smov 8  }
 0x3ad   : > { %2550 = dma.vmem_to_hbm [thread:$0]  (%p3027_p5), %s3174_s21, 256, %s3180_s15, %s1732_s13, %s2821_s25, %s2821_s25, %s2822_s17  }
 0x3ae PF: > { %s3258_s18 = sld [smem:[#allocation18_spill]]  ;;  %s3259_s23 = sld [smem:[#allocation19_spill]] }
 0x3af   : > { %p3261_p2 = scmp.ge.s32.totalorder %s2809_s12, 2 }
 0x3b4   : > { %s1760_s19 = sand.u32 1, %s3258_s18   ;;  %p3260_p1 = scmp.ne.s32.totalorder %s3259_s23, 0 }
 0x3b5   : > { %s1761_s22 = scalar_lea.sflag [#allocation7], %s1760_s19 }
 0x3b6   : > { %p2567_p4 = pnand %p3261_p2, %p3260_p1 }
 0x3b8   : > { %2792 = dma.done.wait (!%p2567_p4), %s1761_s22, 256  }
 0x3b9   : > { %2794 = vsyncadd (!%p2567_p4), %s1761_s22, 4294967040  ;;  %p24_p9 = scmp.ge.s32.totalorder %s3013_s14, 4   ;;  %s3262_s30 = smov %s2801_s10 }
 0x3ba   : > { %s3263_s10 = smov %s2805_s11  ;;  %s3264_s11 = smov %s3023_s16 }
 0x3bb   : > { %s3265_s12 = smov %s3013_s14  ;;  %26 = sbr.rel (!%p24_p9) target bundleno = 9 (0x9), region = 128 }
 0x3c2   :  { %1766 = vsyncpa [#allocation6], 1 }
 0x3c3   :  { %1768 = vsyncpa [#allocation6 + $0x1], 1 }
 0x3c4   :  { %1769 = vsyncpa [#allocation9], 1 }
 0x3c5   :  { %1770 = vsyncpa [#allocation12], 1 }
 0x3c6   :  { %1771 = vsyncpa [#allocation7], 1 }
 0x3c7   :  { %1773 = vsyncpa [#allocation7 + $0x1], 1 }

</bundles_post_ra>
